<compile_context>
chip_gen: v7x
topology: tpu7x:2x2x1
jax: 0.10.0
libtpu: 0.0.40
codegen_flags: <defaults>
</compile_context>

<pallas_src>
import functools

import jax
import jax.numpy as jnp
from jax import lax
from jax.experimental import pallas as pl
from jax.experimental.pallas import tpu as pltpu


_VMEM_LIMIT_BYTES = 48 * 1024 * 1024   # explicit scoped-VMEM budget (safe on v5e/v6e/v7x)
_K1_BLOCK_BUDGET = 12 * 1024 * 1024    # target live block bytes per kernel-1 grid step
_K2_BLOCK_BUDGET = 8 * 1024 * 1024     # target live block bytes per kernel-2 grid step


def _lane_pad(n):
    return ((n + 127) // 128) * 128


def _pick_row_tile(Ho, Wo, stride, k, kc1, cout):
    """Largest multiple-of-8 divisor of Ho whose kernel-1 blocks fit the VMEM budget.

    Prefers >= 2 row tiles when possible (longer grid -> pipelining + 2-TC sharding).
    """
    per_row = (4 * stride * Wo * _lane_pad(kc1) * 2        # halo'd input tile (bf16, 2 bufs)
               + 4 * Wo * _lane_pad(cout) * 2              # conv out (bf16, 2 bufs)
               + 8 * _lane_pad(Wo)                         # umask (f32, 2 bufs)
               + 8 * Wo * _lane_pad(cout))                 # f32 acc / out temporaries
    cap = max(8, _K1_BLOCK_BUDGET // per_row)
    best = None
    for t in range(8, Ho + 1, 8):
        if Ho % t != 0 or t > cap:
            continue
        if t > max(8, Ho // 2):                            # keep >= 2 row tiles when we can
            continue
        best = t
    if best is None:
        best = Ho   # TODO(synk): ragged last row-tile for Ho without a mult-of-8 divisor
    return best


def _pick_bn_tile(rows, cout):
    per_row = 2 * _lane_pad(cout) * (2 + 4)                # bf16 in + f32 out, double-buffered
    cap = max(8, _K2_BLOCK_BUDGET // per_row)
    best = None
    for t in range(8, rows + 1, 8):
        if rows % t == 0 and t <= cap:
            best = t
    return best if best is not None else rows              # TODO(synk): ragged tail tile


def _partial_conv_kernel(k, stride, TH, Wo, kcin, kc1, cout, slide_winsize,
                         x_ref, w_ref, out_ref, umask_ref, sum_ref, sq_ref):
    """One (batch, row-tile) step: partial conv + mask update + BN partial sums.

    x_ref    : (TH_in, Wo, kc1)  bf16  width-im2col'd, halo'd row window.
               Lanes [0, kcin) are the k kx-taps of the image (kx-major, Cin-minor);
               the last k lanes are the k kx-taps of the mask.
    w_ref    : (k, kc1, cout)    bf16  weight folded over (kx, Cin); mask rows are 0.
    out_ref  : (TH*Wo, cout)     bf16  partial-conv output (pre-BN).
    umask_ref: (TH, Wo)          f32   updated mask, lane-dense over Wo.
    sum_ref / sq_ref : (1, cout) f32   per-step partial sums for BN batch statistics.
    """
    hw = TH * Wo
    acc = jnp.zeros((hw, cout), jnp.float32)
    msum_col = jnp.zeros((hw, 1), jnp.float32)   # mask window-sum in (rows, 1) layout
    msum_2d = jnp.zeros((TH, Wo), jnp.float32)   # same values, lane-dense (for umask store)

    for ky in range(k):
        if stride == 1:
            xs = x_ref[ky:ky + TH]                           # (TH, Wo, kc1), leading-dim slice
        else:
            xs = x_ref[pl.ds(ky, TH, stride)]
        xs2 = xs.reshape(hw, kc1)                            # collapse of leading dims only
        acc = acc + jnp.dot(xs2, w_ref[ky], preferred_element_type=jnp.float32)
        msum_col = msum_col + jnp.sum(xs2[:, kcin:].astype(jnp.float32),
                                      axis=-1, keepdims=True)
        msum_2d = msum_2d + jnp.sum(xs[:, :, kcin:].astype(jnp.float32), axis=-1)

    update_col = jnp.clip(msum_col, 0.0, 1.0)
    denom = msum_col + 1e-8
    recip = pl.reciprocal(denom, approx=True)                # EUP seed
    recip = recip * (2.0 - denom * recip)                    # one Newton step (VPU, cheap)
    mask_ratio = (slide_winsize * recip) * update_col

    out = acc * mask_ratio                                   # (hw, cout) f32
    out_ref[...] = out.astype(out_ref.dtype)                 # bf16 store
    umask_ref[...] = jnp.clip(msum_2d, 0.0, 1.0)             # lane-dense (TH, Wo) store
    sum_ref[...] = jnp.sum(out, axis=0, keepdims=True)       # BN stats from f32 values
    sq_ref[...] = jnp.sum(out * out, axis=0, keepdims=True)


def _bn_act_kernel(non_linearity, y_ref, scale_ref, shift_ref, o_ref):
    y = y_ref[...].astype(jnp.float32) * scale_ref[...] + shift_ref[...]
    if non_linearity == 'relu':
        y = jnp.maximum(y, 0.0)
    elif non_linearity == 'leaky':
        y = jnp.where(y >= 0.0, y, 0.2 * y)
    elif non_linearity == 'sigmoid':
        y = jax.nn.sigmoid(y)
    elif non_linearity == 'tanh':
        y = jnp.tanh(y)
    # non_linearity is None -> identity
    o_ref[...] = y


class PartialLayerSN:
    """JAX/Pallas port of PCGAN's PartialLayerSN (bn=True, multi_channel=False path)."""

    def __init__(self, in_size, out_size, kernel_size, stride,
                 non_linearity='relu', bn=True, multi_channel=False,
                 key=jax.random.PRNGKey(0)):
        if multi_channel:
            # TODO(synk): multi_channel mask path (per-channel mask conv) not implemented.
            raise NotImplementedError("multi_channel=True not supported")
        if not bn:
            # TODO(synk): bn=False uses a conv bias and the (raw-b)*ratio+b partial-conv path.
            raise NotImplementedError("bn=False not supported")
        if non_linearity not in ('relu', 'leaky', 'sigmoid', 'tanh', None):
            raise ValueError('unexpected value for non_linearity')

        self.in_size = in_size
        self.out_size = out_size
        self.k = kernel_size
        self.stride = stride
        self.pad = (kernel_size - 1) // 2
        self.non_linearity = non_linearity
        self.slide_winsize = float(1 * kernel_size * kernel_size)  # non-multichannel

        # deterministic conv weight (PyTorch Conv2d-style uniform bound)
        fan_in = in_size * kernel_size * kernel_size
        bound = 1.0 / (fan_in ** 0.5)
        w = jax.random.uniform(key, (out_size, in_size, kernel_size, kernel_size),
                               minval=-bound, maxval=bound, dtype=jnp.float32)
        # spectral norm (glue, once at init): divide by largest singular value of W.view(Cout,-1)
        sigma = jnp.linalg.svd(w.reshape(out_size, -1), compute_uv=False)[0]
        self.w_sn = (w / sigma).astype(jnp.float32)               # OIHW

        # BatchNorm2d default params
        self.gamma = jnp.ones((out_size,), jnp.float32)
        self.beta = jnp.zeros((out_size,), jnp.float32)
        self.bn_eps = 1e-5

    def __call__(self, x_nchw, mask_in=None, return_mask=True):
        x_nchw = x_nchw.astype(jnp.float32)
        N, Cin, H, W = x_nchw.shape
        assert Cin == self.in_size
        k, s, p, Cout = self.k, self.stride, self.pad, self.out_size

        if mask_in is None:
            mask_nchw = jnp.ones((N, 1, H, W), jnp.float32)
            x_masked = x_nchw                 # PyTorch: input not multiplied if mask_in is None
        else:
            mask_nchw = mask_in.astype(jnp.float32)
            x_masked = x_nchw * mask_nchw

        Ho = (H + 2 * p - k) // s + 1
        Wo = (W + 2 * p - k) // s + 1
        hw = Ho * Wo
        kcin = k * Cin
        kc1 = kcin + k                        # + k mask taps

        TH = _pick_row_tile(Ho, Wo, s, k, kc1, Cout)
        nT = Ho // TH
        TH_in = (TH - 1) * s + k              # halo'd input rows per row tile

        # ---- glue: NCHW -> NHWC, zero-pad, width-im2col (fold kx + mask taps into lanes),
        #            bf16, then pre-split into halo'd row tiles (halo fraction (k-s)/(TH*s)).
        x_nhwc = jnp.transpose(x_masked, (0, 2, 3, 1))
        m_nhwc = jnp.transpose(mask_nchw, (0, 2, 3, 1))
        xpad = jnp.pad(x_nhwc, ((0, 0), (p, p), (p, p), (0, 0)))
        mpad = jnp.pad(m_nhwc, ((0, 0), (p, p), (p, p), (0, 0)))
        limit = (Wo - 1) * s + 1
        xtaps = [lax.slice_in_dim(xpad, kx, kx + limit, stride=s, axis=2) for kx in range(k)]
        mtaps = [lax.slice_in_dim(mpad, kx, kx + limit, stride=s, axis=2) for kx in range(k)]
        xcol = jnp.concatenate(xtaps + mtaps, axis=-1).astype(jnp.bfloat16)   # (N,Hp,Wo,kc1)
        xtiles = jnp.stack(
            [lax.dynamic_slice_in_dim(xcol, t * TH * s, TH_in, axis=1) for t in range(nT)],
            axis=1)                                                           # (N,nT,TH_in,Wo,kc1)

        # weight OIHW -> (ky, kx*Cin + c, o); k zero rows for the mask taps
        w_hwio = jnp.transpose(self.w_sn, (2, 3, 1, 0)).reshape(k, kcin, Cout)
        w_fold = jnp.concatenate([w_hwio, jnp.zeros((k, k, Cout), jnp.float32)],
                                 axis=1).astype(jnp.bfloat16)                 # (k, kc1, Cout)

        # ---- kernel 1: partial conv + mask update + BN partial sums ----
        conv_out, umask, ssum, ssq = pl.pallas_call(
            functools.partial(_partial_conv_kernel, k, s, TH, Wo, kcin, kc1, Cout,
                              self.slide_winsize),
            out_shape=(
                jax.ShapeDtypeStruct((N, hw, Cout), jnp.bfloat16),
                jax.ShapeDtypeStruct((N, Ho, Wo), jnp.float32),
                jax.ShapeDtypeStruct((N, nT, 1, Cout), jnp.float32),
                jax.ShapeDtypeStruct((N, nT, 1, Cout), jnp.float32),
            ),
            grid_spec=pltpu.PrefetchScalarGridSpec(
                num_scalar_prefetch=0,
                grid=(N, nT),
                in_specs=[
                    pl.BlockSpec((None, None, TH_in, Wo, kc1),
                                 lambda n, t: (n, t, 0, 0, 0)),
                    pl.BlockSpec((k, kc1, Cout), lambda n, t: (0, 0, 0)),
                ],
                out_specs=[
                    pl.BlockSpec((None, TH * Wo, Cout), lambda n, t: (n, t, 0)),
                    pl.BlockSpec((None, TH, Wo), lambda n, t: (n, t, 0)),
                    pl.BlockSpec((None, None, 1, Cout), lambda n, t: (n, t, 0, 0)),
                    pl.BlockSpec((None, None, 1, Cout), lambda n, t: (n, t, 0, 0)),
                ],
            ),
            compiler_params=pltpu.CompilerParams(
                dimension_semantics=("parallel", "parallel"),
                vmem_limit_bytes=_VMEM_LIMIT_BYTES),
        )(xtiles, w_fold)

        # ---- glue: BatchNorm (training-mode batch stats) folded into one FMA ----
        count = float(N * hw)
        mean = jnp.sum(ssum, axis=(0, 1)) / count                     # (1, Cout)
        var = jnp.maximum(jnp.sum(ssq, axis=(0, 1)) / count - mean * mean, 0.0)
        rstd = lax.rsqrt(var + self.bn_eps)
        scale = self.gamma.reshape(1, Cout) * rstd                    # (1, Cout)
        shift = self.beta.reshape(1, Cout) - mean * scale             # (1, Cout)

        # ---- kernel 2: y = x*scale + shift, then activation (large lane-dense tiles) ----
        TS = _pick_bn_tile(hw, Cout)
        y_bn = pl.pallas_call(
            functools.partial(_bn_act_kernel, self.non_linearity),
            out_shape=jax.ShapeDtypeStruct((N, hw, Cout), jnp.float32),
            grid_spec=pltpu.PrefetchScalarGridSpec(
                num_scalar_prefetch=0,
                grid=(N, hw // TS),
                in_specs=[
                    pl.BlockSpec((None, TS, Cout), lambda n, i: (n, i, 0)),
                    pl.BlockSpec((1, Cout), lambda n, i: (0, 0)),
                    pl.BlockSpec((1, Cout), lambda n, i: (0, 0)),
                ],
                out_specs=pl.BlockSpec((None, TS, Cout), lambda n, i: (n, i, 0)),
            ),
            compiler_params=pltpu.CompilerParams(
                dimension_semantics=("parallel", "parallel"),
                vmem_limit_bytes=_VMEM_LIMIT_BYTES),
        )(conv_out, scale, shift)

        # TODO(synk): fusing this NHWC->NCHW transpose into kernel 2 needs an in-kernel
        #             (rows, Cout) transpose, which Mosaic does not guarantee to lower for
        #             non-128-multiple Cout (Cout=8 here); left as one XLA pass.
        y = jnp.transpose(y_bn.reshape(N, Ho, Wo, Cout), (0, 3, 1, 2))
        mask_out = umask.reshape(N, 1, Ho, Wo)   # free: identical row-major layout

        if return_mask:
            return y, mask_out
        return y


def _reference_forward(layer, x_nchw, mask_nchw):
    """Pure-JAX reference of the PyTorch forward (bn=True, relu path), mirroring the
    kernel's bf16 rounding of conv inputs/weights and of the stored conv activations
    (f32 accumulation / f32 BN statistics)."""
    k, s, p = layer.k, layer.stride, layer.pad
    f32 = jnp.float32
    xm = (x_nchw * mask_nchw).astype(jnp.bfloat16).astype(f32)
    mb = mask_nchw.astype(jnp.bfloat16).astype(f32)
    wb = layer.w_sn.astype(jnp.bfloat16).astype(f32)

    um = lax.conv_general_dilated(mb, jnp.ones((1, 1, k, k), f32),
                                  (s, s), [(p, p), (p, p)])
    umc = jnp.clip(um, 0.0, 1.0)
    mask_ratio = (layer.slide_winsize / (um + 1e-8)) * umc
    raw = lax.conv_general_dilated(xm, wb, (s, s), [(p, p), (p, p)])
    out = raw * mask_ratio
    mean = jnp.mean(out, axis=(0, 2, 3), keepdims=True)
    var = jnp.mean((out - mean) ** 2, axis=(0, 2, 3), keepdims=True)
    out_q = out.astype(jnp.bfloat16).astype(f32)          # mirror bf16 conv_out storage
    y = (out_q - mean) / jnp.sqrt(var + layer.bn_eps)
    y = y * layer.gamma.reshape(1, -1, 1, 1) + layer.beta.reshape(1, -1, 1, 1)
    y = jnp.maximum(y, 0.0)
    return y, umc


if __name__ == "__main__":
    key = jax.random.PRNGKey(0)
    k_w, k_x, k_m = jax.random.split(key, 3)

    N, Cin, H, W = 2, 4, 16, 16
    Cout, ksize, stride = 8, 3, 1

    layer = PartialLayerSN(Cin, Cout, ksize, stride,
                           non_linearity='relu', bn=True,
                           multi_channel=False, key=k_w)

    x = jax.random.normal(k_x, (N, Cin, H, W), dtype=jnp.float32)
    # binary hole mask (1 = valid pixel), shape (N, 1, H, W) as in PartialConv usage
    mask_in = (jax.random.uniform(k_m, (N, 1, H, W)) > 0.3).astype(jnp.float32)

    y, mask_out = layer(x, mask_in=mask_in, return_mask=True)
    y = jax.block_until_ready(y)
    mask_out = jax.block_until_ready(mask_out)

    y_ref, mask_ref = _reference_forward(layer, x, mask_in)
    assert y.shape == (N, Cout, H, W)
    assert mask_out.shape == (N, 1, H, W)
    err = float(jnp.max(jnp.abs(y - y_ref)))
    # bf16-stored conv activations => ~1 bf16 ulp (2^-8) end-to-end tolerance.
    assert jnp.allclose(y, y_ref, atol=4e-3, rtol=4e-3), f"max err {err}"
    assert jnp.allclose(mask_out, mask_ref, atol=1e-6)

    print("KERNEL_OK")
</pallas_src>

<mosaic_0001>
module attributes {stable_mosaic.version = 11 : i64} {
  func.func @_partial_conv_kernel(%arg0: i32, %arg1: i32, %arg2: memref<1x1x10x16x15xbf16, #tpu.memory_space<vmem>>, %arg3: memref<3x15x8xbf16, #tpu.memory_space<vmem>>, %arg4: memref<1x128x8xbf16, #tpu.memory_space<vmem>>, %arg5: memref<1x8x16xf32, #tpu.memory_space<vmem>>, %arg6: memref<1x1x1x8xf32, #tpu.memory_space<vmem>>, %arg7: memref<1x1x1x8xf32, #tpu.memory_space<vmem>>) attributes {dimension_semantics = [#tpu.dimension_semantics<parallel>, #tpu.dimension_semantics<parallel>], iteration_bounds = array<i64: 2, 2>, scalar_prefetch = 0 : i64, scratch_operands = 0 : i64, tpu.core_type = #tpu.core_type<tc>, window_params = [{transform_indices = @transform_0, window_bounds = array<i64: 1, 1, 10, 16, 15>}, {pipeline_mode = #tpu.pipeline_mode<synchronous>, transform_indices = @transform_1, window_bounds = array<i64: 3, 15, 8>}, {transform_indices = @transform_2, window_bounds = array<i64: 1, 128, 8>}, {transform_indices = @transform_3, window_bounds = array<i64: 1, 8, 16>}, {transform_indices = @transform_4, window_bounds = array<i64: 1, 1, 1, 8>}, {transform_indices = @transform_5, window_bounds = array<i64: 1, 1, 1, 8>}]} {
    %cst = arith.constant 0.000000e+00 : f32
    %0 = vector.broadcast %cst : f32 to vector<128x8xf32>
    %cst_0 = arith.constant 0.000000e+00 : f32
    %1 = vector.broadcast %cst_0 : f32 to vector<128x1xf32>
    %cst_1 = arith.constant 0.000000e+00 : f32
    %2 = vector.broadcast %cst_1 : f32 to vector<8x16xf32>
    %c0 = arith.constant 0 : index
    %c0_2 = arith.constant 0 : index
    %c0_3 = arith.constant 0 : index
    %c0_4 = arith.constant 0 : index
    %c0_5 = arith.constant 0 : index
    %3 = vector.load %arg2[%c0, %c0_2, %c0_3, %c0_4, %c0_5] : memref<1x1x10x16x15xbf16, #tpu.memory_space<vmem>>, vector<1x1x8x16x15xbf16>
    %4 = vector.shape_cast %3 : vector<1x1x8x16x15xbf16> to vector<8x16x15xbf16>
    %5 = vector.shape_cast %4 : vector<8x16x15xbf16> to vector<128x15xbf16>
    %c0_6 = arith.constant 0 : index
    %c0_7 = arith.constant 0 : index
    %c0_8 = arith.constant 0 : index
    %6 = vector.load %arg3[%c0_6, %c0_7, %c0_8] : memref<3x15x8xbf16, #tpu.memory_space<vmem>>, vector<1x15x8xbf16>
    %7 = vector.shape_cast %6 : vector<1x15x8xbf16> to vector<15x8xbf16>
    %cst_9 = arith.constant dense<0.000000e+00> : vector<128x8xf32>
    %8 = tpu.matmul %5, %7, %cst_9 {dimension_numbers = #tpu.dot_dimension_numbers<[1], [0], [0], [1], [0, 0, 1, 1], [], []>} : vector<128x15xbf16>, vector<15x8xbf16>, vector<128x8xf32> -> vector<128x8xf32>
    %9 = arith.addf %0, %8 : vector<128x8xf32>
    %10 = vector.extract_strided_slice %5 {offsets = [0, 12], sizes = [128, 3], strides = [1, 1]} : vector<128x15xbf16> to vector<128x3xbf16>
    %11 = arith.extf %10 : vector<128x3xbf16> to vector<128x3xf32>
    %cst_10 = arith.constant dense<0.000000e+00> : vector<128xf32>
    %12 = vector.multi_reduction <add>, %11, %cst_10 [1] : vector<128x3xf32> to vector<128xf32>
    %13 = vector.shape_cast %12 : vector<128xf32> to vector<128x1xf32>
    %14 = arith.addf %1, %13 : vector<128x1xf32>
    %15 = vector.extract_strided_slice %4 {offsets = [0, 0, 12], sizes = [8, 16, 3], strides = [1, 1, 1]} : vector<8x16x15xbf16> to vector<8x16x3xbf16>
    %16 = arith.extf %15 : vector<8x16x3xbf16> to vector<8x16x3xf32>
    %cst_11 = arith.constant dense<0.000000e+00> : vector<8x16xf32>
    %17 = vector.multi_reduction <add>, %16, %cst_11 [2] : vector<8x16x3xf32> to vector<8x16xf32>
    %18 = arith.addf %2, %17 : vector<8x16xf32>
    %c0_12 = arith.constant 0 : index
    %c0_13 = arith.constant 0 : index
    %c1 = arith.constant 1 : index
    %c0_14 = arith.constant 0 : index
    %c0_15 = arith.constant 0 : index
    %19 = vector.load %arg2[%c0_12, %c0_13, %c1, %c0_14, %c0_15] : memref<1x1x10x16x15xbf16, #tpu.memory_space<vmem>>, vector<1x1x8x16x15xbf16>
    %20 = vector.shape_cast %19 : vector<1x1x8x16x15xbf16> to vector<8x16x15xbf16>
    %21 = vector.shape_cast %20 : vector<8x16x15xbf16> to vector<128x15xbf16>
    %c1_16 = arith.constant 1 : index
    %c0_17 = arith.constant 0 : index
    %c0_18 = arith.constant 0 : index
    %22 = vector.load %arg3[%c1_16, %c0_17, %c0_18] : memref<3x15x8xbf16, #tpu.memory_space<vmem>>, vector<1x15x8xbf16>
    %23 = vector.shape_cast %22 : vector<1x15x8xbf16> to vector<15x8xbf16>
    %cst_19 = arith.constant dense<0.000000e+00> : vector<128x8xf32>
    %24 = tpu.matmul %21, %23, %cst_19 {dimension_numbers = #tpu.dot_dimension_numbers<[1], [0], [0], [1], [0, 0, 1, 1], [], []>} : vector<128x15xbf16>, vector<15x8xbf16>, vector<128x8xf32> -> vector<128x8xf32>
    %25 = arith.addf %9, %24 : vector<128x8xf32>
    %26 = vector.extract_strided_slice %21 {offsets = [0, 12], sizes = [128, 3], strides = [1, 1]} : vector<128x15xbf16> to vector<128x3xbf16>
    %27 = arith.extf %26 : vector<128x3xbf16> to vector<128x3xf32>
    %cst_20 = arith.constant dense<0.000000e+00> : vector<128xf32>
    %28 = vector.multi_reduction <add>, %27, %cst_20 [1] : vector<128x3xf32> to vector<128xf32>
    %29 = vector.shape_cast %28 : vector<128xf32> to vector<128x1xf32>
    %30 = arith.addf %14, %29 : vector<128x1xf32>
    %31 = vector.extract_strided_slice %20 {offsets = [0, 0, 12], sizes = [8, 16, 3], strides = [1, 1, 1]} : vector<8x16x15xbf16> to vector<8x16x3xbf16>
    %32 = arith.extf %31 : vector<8x16x3xbf16> to vector<8x16x3xf32>
    %cst_21 = arith.constant dense<0.000000e+00> : vector<8x16xf32>
    %33 = vector.multi_reduction <add>, %32, %cst_21 [2] : vector<8x16x3xf32> to vector<8x16xf32>
    %34 = arith.addf %18, %33 : vector<8x16xf32>
    %c0_22 = arith.constant 0 : index
    %c0_23 = arith.constant 0 : index
    %c2 = arith.constant 2 : index
    %c0_24 = arith.constant 0 : index
    %c0_25 = arith.constant 0 : index
    %35 = vector.load %arg2[%c0_22, %c0_23, %c2, %c0_24, %c0_25] : memref<1x1x10x16x15xbf16, #tpu.memory_space<vmem>>, vector<1x1x8x16x15xbf16>
    %36 = vector.shape_cast %35 : vector<1x1x8x16x15xbf16> to vector<8x16x15xbf16>
    %37 = vector.shape_cast %36 : vector<8x16x15xbf16> to vector<128x15xbf16>
    %c2_26 = arith.constant 2 : index
    %c0_27 = arith.constant 0 : index
    %c0_28 = arith.constant 0 : index
    %38 = vector.load %arg3[%c2_26, %c0_27, %c0_28] : memref<3x15x8xbf16, #tpu.memory_space<vmem>>, vector<1x15x8xbf16>
    %39 = vector.shape_cast %38 : vector<1x15x8xbf16> to vector<15x8xbf16>
    %cst_29 = arith.constant dense<0.000000e+00> : vector<128x8xf32>
    %40 = tpu.matmul %37, %39, %cst_29 {dimension_numbers = #tpu.dot_dimension_numbers<[1], [0], [0], [1], [0, 0, 1, 1], [], []>} : vector<128x15xbf16>, vector<15x8xbf16>, vector<128x8xf32> -> vector<128x8xf32>
    %41 = arith.addf %25, %40 : vector<128x8xf32>
    %42 = vector.extract_strided_slice %37 {offsets = [0, 12], sizes = [128, 3], strides = [1, 1]} : vector<128x15xbf16> to vector<128x3xbf16>
    %43 = arith.extf %42 : vector<128x3xbf16> to vector<128x3xf32>
    %cst_30 = arith.constant dense<0.000000e+00> : vector<128xf32>
    %44 = vector.multi_reduction <add>, %43, %cst_30 [1] : vector<128x3xf32> to vector<128xf32>
    %45 = vector.shape_cast %44 : vector<128xf32> to vector<128x1xf32>
    %46 = arith.addf %30, %45 : vector<128x1xf32>
    %47 = vector.extract_strided_slice %36 {offsets = [0, 0, 12], sizes = [8, 16, 3], strides = [1, 1, 1]} : vector<8x16x15xbf16> to vector<8x16x3xbf16>
    %48 = arith.extf %47 : vector<8x16x3xbf16> to vector<8x16x3xf32>
    %cst_31 = arith.constant dense<0.000000e+00> : vector<8x16xf32>
    %49 = vector.multi_reduction <add>, %48, %cst_31 [2] : vector<8x16x3xf32> to vector<8x16xf32>
    %50 = arith.addf %34, %49 : vector<8x16xf32>
    %cst_32 = arith.constant 0.000000e+00 : f32
    %cst_33 = arith.constant 1.000000e+00 : f32
    %51 = vector.broadcast %cst_32 : f32 to vector<128x1xf32>
    %52 = arith.maximumf %51, %46 : vector<128x1xf32>
    %53 = vector.broadcast %cst_33 : f32 to vector<128x1xf32>
    %54 = arith.minimumf %53, %52 : vector<128x1xf32>
    %cst_34 = arith.constant 9.99999993E-9 : f32
    %55 = vector.broadcast %cst_34 : f32 to vector<128x1xf32>
    %56 = arith.addf %46, %55 : vector<128x1xf32>
    %57 = tpu.reciprocal %56 {approx = true} : vector<128x1xf32> -> vector<128x1xf32>
    %58 = arith.mulf %56, %57 : vector<128x1xf32>
    %cst_35 = arith.constant 2.000000e+00 : f32
    %59 = vector.broadcast %cst_35 : f32 to vector<128x1xf32>
    %60 = arith.subf %59, %58 : vector<128x1xf32>
    %61 = arith.mulf %57, %60 : vector<128x1xf32>
    %cst_36 = arith.constant 9.000000e+00 : f32
    %62 = vector.broadcast %cst_36 : f32 to vector<128x1xf32>
    %63 = arith.mulf %62, %61 : vector<128x1xf32>
    %64 = arith.mulf %63, %54 : vector<128x1xf32>
    %65 = vector.broadcast %64 : vector<128x1xf32> to vector<128x8xf32>
    %66 = arith.mulf %41, %65 : vector<128x8xf32>
    %67 = arith.truncf %66 : vector<128x8xf32> to vector<128x8xbf16>
    %c0_37 = arith.constant 0 : index
    %c0_38 = arith.constant 0 : index
    %c0_39 = arith.constant 0 : index
    %68 = vector.load %arg4[%c0_37, %c0_38, %c0_39] : memref<1x128x8xbf16, #tpu.memory_space<vmem>>, vector<1x128x8xbf16>
    %69 = vector.shape_cast %68 : vector<1x128x8xbf16> to vector<128x8xbf16>
    %70 = vector.shape_cast %67 : vector<128x8xbf16> to vector<1x128x8xbf16>
    tpu.vector_store %arg4[%c0_37, %c0_38, %c0_39], %70 {strides = array<i32>} : memref<1x128x8xbf16, #tpu.memory_space<vmem>>, vector<1x128x8xbf16>,
    %cst_40 = arith.constant 0.000000e+00 : f32
    %cst_41 = arith.constant 1.000000e+00 : f32
    %71 = vector.broadcast %cst_40 : f32 to vector<8x16xf32>
    %72 = arith.maximumf %71, %50 : vector<8x16xf32>
    %73 = vector.broadcast %cst_41 : f32 to vector<8x16xf32>
    %74 = arith.minimumf %73, %72 : vector<8x16xf32>
    %c0_42 = arith.constant 0 : index
    %c0_43 = arith.constant 0 : index
    %c0_44 = arith.constant 0 : index
    %75 = vector.load %arg5[%c0_42, %c0_43, %c0_44] : memref<1x8x16xf32, #tpu.memory_space<vmem>>, vector<1x8x16xf32>
    %76 = vector.shape_cast %75 : vector<1x8x16xf32> to vector<8x16xf32>
    %77 = vector.shape_cast %74 : vector<8x16xf32> to vector<1x8x16xf32>
    tpu.vector_store %arg5[%c0_42, %c0_43, %c0_44], %77 {strides = array<i32>} : memref<1x8x16xf32, #tpu.memory_space<vmem>>, vector<1x8x16xf32>,
    %cst_45 = arith.constant dense<0.000000e+00> : vector<8xf32>
    %78 = vector.multi_reduction <add>, %66, %cst_45 [0] : vector<128x8xf32> to vector<8xf32>
    %79 = vector.shape_cast %78 : vector<8xf32> to vector<1x8xf32>
    %c0_46 = arith.constant 0 : index
    %c0_47 = arith.constant 0 : index
    %c0_48 = arith.constant 0 : index
    %c0_49 = arith.constant 0 : index
    %80 = vector.load %arg6[%c0_46, %c0_47, %c0_48, %c0_49] : memref<1x1x1x8xf32, #tpu.memory_space<vmem>>, vector<1x1x1x8xf32>
    %81 = vector.shape_cast %80 : vector<1x1x1x8xf32> to vector<1x8xf32>
    %82 = vector.shape_cast %79 : vector<1x8xf32> to vector<1x1x1x8xf32>
    tpu.vector_store %arg6[%c0_46, %c0_47, %c0_48, %c0_49], %82 {strides = array<i32>} : memref<1x1x1x8xf32, #tpu.memory_space<vmem>>, vector<1x1x1x8xf32>,
    %83 = arith.mulf %66, %66 : vector<128x8xf32>
    %cst_50 = arith.constant dense<0.000000e+00> : vector<8xf32>
    %84 = vector.multi_reduction <add>, %83, %cst_50 [0] : vector<128x8xf32> to vector<8xf32>
    %85 = vector.shape_cast %84 : vector<8xf32> to vector<1x8xf32>
    %c0_51 = arith.constant 0 : index
    %c0_52 = arith.constant 0 : index
    %c0_53 = arith.constant 0 : index
    %c0_54 = arith.constant 0 : index
    %86 = vector.load %arg7[%c0_51, %c0_52, %c0_53, %c0_54] : memref<1x1x1x8xf32, #tpu.memory_space<vmem>>, vector<1x1x1x8xf32>
    %87 = vector.shape_cast %86 : vector<1x1x1x8xf32> to vector<1x8xf32>
    %88 = vector.shape_cast %85 : vector<1x8xf32> to vector<1x1x1x8xf32>
    tpu.vector_store %arg7[%c0_51, %c0_52, %c0_53, %c0_54], %88 {strides = array<i32>} : memref<1x1x1x8xf32, #tpu.memory_space<vmem>>, vector<1x1x1x8xf32>,
    return
  }
  func.func @transform_0(%arg0: i32, %arg1: i32) -> (i32, i32, i32, i32, i32) {
    %c0_i32 = arith.constant 0 : i32
    %c0_i32_0 = arith.constant 0 : i32
    %c0_i32_1 = arith.constant 0 : i32
    %c0_i32_2 = arith.constant 0 : i32
    return %arg0, %arg1, %c0_i32, %c0_i32_0, %c0_i32_1 : i32, i32, i32, i32, i32
  }
  func.func @transform_1(%arg0: i32, %arg1: i32) -> (i32, i32, i32) {
    %c0_i32 = arith.constant 0 : i32
    %c0_i32_0 = arith.constant 0 : i32
    %c0_i32_1 = arith.constant 0 : i32
    %c0_i32_2 = arith.constant 0 : i32
    return %c0_i32, %c0_i32_0, %c0_i32_1 : i32, i32, i32
  }
  func.func @transform_2(%arg0: i32, %arg1: i32) -> (i32, i32, i32) {
    %c0_i32 = arith.constant 0 : i32
    %c0_i32_0 = arith.constant 0 : i32
    return %arg0, %arg1, %c0_i32 : i32, i32, i32
  }
  func.func @transform_3(%arg0: i32, %arg1: i32) -> (i32, i32, i32) {
    %c0_i32 = arith.constant 0 : i32
    %c0_i32_0 = arith.constant 0 : i32
    return %arg0, %arg1, %c0_i32 : i32, i32, i32
  }
  func.func @transform_4(%arg0: i32, %arg1: i32) -> (i32, i32, i32, i32) {
    %c0_i32 = arith.constant 0 : i32
    %c0_i32_0 = arith.constant 0 : i32
    %c0_i32_1 = arith.constant 0 : i32
    return %arg0, %arg1, %c0_i32, %c0_i32_0 : i32, i32, i32, i32
  }
  func.func @transform_5(%arg0: i32, %arg1: i32) -> (i32, i32, i32, i32) {
    %c0_i32 = arith.constant 0 : i32
    %c0_i32_0 = arith.constant 0 : i32
    %c0_i32_1 = arith.constant 0 : i32
    return %arg0, %arg1, %c0_i32, %c0_i32_0 : i32, i32, i32, i32
  }
}

</mosaic_0001>

<bundles_post_ra>
// kernel: tpu_custom_call.1
= control target key start
LH: loop header
LB: loop body
LE: loop exit
PB: predicated region body
PF: predicated region fallthrough
CT: control target
= control target key end

     0   :  { %s3457_s0 = inlined_call_operand.vmem [shape: bf16[2,2,10,16,15], index: 0, kind: input, shape index: {}]   ;;  %s3458_s1 = inlined_call_operand.vmem [shape: bf16[3,15,8], index: 1, kind: input, shape index: {}]   ;;  %s3459_s2 = inlined_call_operand.vmem [shape: bf16[2,256,8], index: 2, kind: output, shape index: {0}]   ;;  %s3460_s3 = inlined_call_operand.hbm [shape: f32[2,16,16], index: 3, kind: output, shape index: {1}]   ;;  %s3461_s4 = inlined_call_operand.hbm [shape: f32[2,2,1,8], index: 4, kind: output, shape index: {2}]   ;;  %s3462_s5 = inlined_call_operand.hbm [shape: f32[2,2,1,8], index: 5, kind: output, shape index: {3}]  }
   0x1   :  { %3466 = sst [smem:[#allocation9_spill]] %s3457_s0 }
   0x2   :  { %11 = vsyncpa [#allocation3], 0 }
   0x3   :  { %13 = vsyncpa [#allocation3 + $0x1], 0 }
   0x4   :  { %14 = vsyncpa [#allocation5], 0 }
   0x5   :  { %16 = vsyncpa [#allocation5 + $0x1], 0  ;;  %s2732_s18 = smov 0   ;;  %s2734_s19 = smov 0  }
   0x6   :  { %s2736_s20 = smov 0   ;;  %s2738_s21 = smov 0  }
   0x7   :  { %s2740_s22 = smov 0   ;;  %s2742_s23 = smov 0  }
   0x8   :  { %s2744_s24 = smov 0   ;;  %s2746_s25 = smov 0  }
   0x9 LB: > { %s3464_s26 = sadd.s32 4294967295, %s2695_s25   ;;  %s3463_s27 = sadd.s32 4294967294, %s2695_s25   ;;  %s2695_s25 = sphi %s2746_s25, %s22_s25   ;;  %s2691_s24 = sphi %s2744_s24, %s3479_s24   ;;  %s2687_s23 = sphi %s2742_s23, %s3478_s23   ;;  %s2683_s22 = sphi %s2740_s22, %s3477_s22   ;;  %s2679_s21 = sphi %s2738_s21, %s3476_s21   ;;  %s2675_s20 = sphi %s2736_s20, %s3475_s20   ;;  %s2671_s19 = sphi %s2734_s19, %s3474_s19   ;;  %s2667_s18 = sphi %s2732_s18, %s3473_s18  }
   0xa   : > { %s31_s28 = sadd.s32 1, %s2687_s23  ;;  %s34_s29 = sadd.s32 1, %s2691_s24 }
   0xb   : > { %p32_p0 = scmp.ge.s32.totalorder %s31_s28, 2  ;;  %p130_p1 = scmp.ne.s32.totalorder %s2675_s20, %s2671_s19 }
   0xc   : > { %p131_p2 = scmp.eq.s32.totalorder %s3464_s26, 3  ;;  %p136_p5 = scmp.ne.s32.totalorder %s2671_s19, %s2667_s18 }
   0xd   : > { %s3481_s28 = smov (%p32_p0, %s31_s28), 0  ;;  %s3483_s29 = smov (!%p32_p0, %s34_s29), %s2691_s24 }
   0xe   : > { %s116_s30 = ssub.s32 %s2687_s23, %s3481_s28  ;;  %p2785_p3 = por %p131_p2, %p130_p1 }
   0xf   : > { %p36_p4 = scmp.ge.s32.totalorder %s3483_s29, 2  ;;  %p137_p6 = scmp.eq.s32.totalorder %s3463_s27, 3 }
  0x10   : > { %p2004_p7 = scmp.ge.s32.totalorder %s2695_s25, 1  ;;  %p226_p9 = scmp.lt.s32.totalorder %s2695_s25, 5 }
  0x11   : > { %s3485_s29 = smov (%p36_p4, %s3483_s29), 0  ;;  %p2796_p8 = por %p137_p6, %p136_p5 }
  0x12   : > { %s115_s8 = ssub.s32 %s2691_s24, %s3485_s29  ;;  %s120_s9 = sadd.s32 1, %s2675_s20 }
  0x13   : > { %s117_s10 = sor.u32 %s116_s30, %s115_s8  ;;  %p227_p10 = pnand %p2004_p7, %p226_p9 }
  0x14   : > { %p118_p11 = scmp.eq.s32.totalorder %s117_s10, 0  ;;  %p275_p12 = scmp.lt.s32.totalorder (!%p227_p10), %s2683_s22, 1  ;;  %vm548_vm0 = vcmask (!%p227_p10), 1046528   ;;  %vm549_vm1 = vcmask (!%p227_p10), 1047552   ;;  %v2461_v0 = vld [vmem:[%s3458_s1] sm:$0xff] (!%p227_p10)   ;;  %v2697_v1 = vmov (!%p227_p10), 65535  }
  0x15   : > { %230 = sbr.rel (%p227_p10) target bundleno = 502 (0x1f6), region = 28  ;;  %p277_p13 = scmp.lt.s32.totalorder (!%p227_p10), %s2679_s21, 1  ;;  %v550_v2 = vsel (!%p227_p10), %vm548_vm0, 4294967295, %v2697_v1  ;;  %v2465_v4 = vld [vmem:[%s3458_s1 + $0x8] sm:$0xff] (!%p227_p10)   ;;  %v2466_v5 = vld [vmem:[%s3458_s1 + $0x10] sm:$0xff] (!%p227_p10)   ;;  %vm523_vm2 = vcmask (!%p227_p10), 121856  }
  0x16   : > { %s2805_s11 = scalar_select %p118_p11, %s2675_s20, %s120_s9  }
  0x17   : > { %v551_v3 = vsel (!%p227_p10), %vm549_vm1, %v550_v2, 0  ;;  %s3469_s0 = sld [smem:[#allocation9_spill]] (!%p227_p10)  ;;  %vm393_vm3 = vcmask (!%p227_p10), 23552   ;;  %s2007_s8 = sshll.u32 (!%p227_p10), %s2679_s21, 4  ;;  %vm1538_vm4 = vcmask (!%p227_p10), 60416   ;;  %vm1664_vm5 = vcmask (!%p227_p10), 64512  }
  0x18   : > { %v2823_v6 = vand.u32 (!%p227_p10), %v2461_v0, %v551_v3  ;;  %v553_v7 = vand.u32 (!%p227_p10), %v2465_v4, %v551_v3  ;;  %v2825_v8 = vand.u32 (!%p227_p10), %v2466_v5, %v551_v3  ;;  %p287_p0 = scmp.lt.s32.totalorder (!%p227_p10), %s2007_s8, 31  ;;  %vm1582_vm6 = vcmask (!%p227_p10), 130112   ;;  %s3253_s17 = sand.u32 (!%p227_p10), 1, %s2671_s19  }
  0x19   : > { %vm1647_vm7 = vcmask (!%p227_p10), 1041409   ;;  %vm1649_vm8 = vcmask (!%p227_p10), 1042434   ;;  %vm1651_vm9 = vcmask (!%p227_p10), 1043459   ;;  %vm1653_vm10 = vcmask (!%p227_p10), 1044484  }
  0x1a   : > { %2183 = vmatprep.subr.bf16.mxu0 (!%p227_p10), %v2823_v6  ;;  %2165 = vmatprep.subr.bf16.mxu1 (!%p227_p10), %v553_v7  ;;  %vm1655_vm11 = vcmask (!%p227_p10), 1045509   ;;  %vm1657_vm12 = vcmask (!%p227_p10), 1046534   ;;  %vm1659_vm13 = vcmask (!%p227_p10), 1047559   ;;  %vm1662_vm14 = vcmask (!%p227_p10), 130048  }
  0x1b   : > { %2184 = vmatpush3.bf16.msra.mxu0 (!%p227_p10), %v2823_v6  ;;  %2166 = vmatpush3.bf16.msra.mxu1 (!%p227_p10), %v553_v7 }
  0x1c   : > { %s2813_s14 = scalar_select %p275_p12, %s2683_s22, 1  ;;  %2201 = vmatprep.subr.bf16.mxu0 %v2825_v8  ;;  %2219 = vmatprep.subr.bf16.mxu1 %v2823_v6 }
  0x1d   : > { %s278_s15 = scalar_select %p277_p13, %s2679_s21, 1 }
  0x1e   : > { %s2254_s9 = smul.u32 40, %s2813_s14  ;;  %s3487_s8 = smov (!%p287_p0, %s2007_s8), 31 }
  0x1f   : > { %s2253_s10 = smul.u32 20, %s278_s15  ;;  %s2698_s15 = smov 116  }
  0x21   : > { %s281_s12 = sadd.s32 %s2254_s9, %s2253_s10  ;;  %s2008_s9 = sshll.u32 %s2813_s14, 5 }
  0x22   : > { %s2006_s13 = sshll.u32 %s281_s12, 2  ;;  %s290_s10 = sadd.s32 %s2008_s9, %s3487_s8 }
  0x23   : > { %s2833_s30 = scalar_lea.vmem %s3469_s0, %s2006_s13  ;;  %s2009_s12 = sshll.u32 %s290_s10, 2 }
  0x24   : > { %v299_v9 = vld [vmem:[%s2833_s30 + $0x10] sm:$0xff]   ;;  %v2838_v10 = vld [vmem:[%s2833_s30 + $0x18] sm:$0xff]   ;;  %v295_v14 = vld [vmem:[%s2833_s30] sm:$0xff]   ;;  %s3073_s16 = scalar_lea.vmem %s3459_s2, %s2009_s12  ;;  %s1768_s13 = scalar_lea.sflag [#allocation3], %s3253_s17 }
  0x25   : > { %v317_v11 = vunpack.c.l.bf16 %v299_v9  ;;  %v318_v12 = vunpack.c.h.bf16 %v299_v9  ;;  %v319_v13 = vunpack.c.l.bf16 %v2838_v10  ;;  %v320_v15 = vunpack.c.h.bf16 %v2838_v10  ;;  %v2844_v16 = vld [vmem:[%s2833_s30 + $0x28] sm:$0xff]   ;;  %v2851_v24 = vld [vmem:[%s2833_s30 + $0x38] sm:$0xff]   ;;  %v2854_v28 = vld [vmem:[%s2833_s30 + $0x20] sm:$0xff]   ;;  %2185 = vmatprep.mubr.msk.bf16.mxu0 %vm523_vm2, %v295_v14 }
  0x26   : > { %v313_v18 = vunpack.c.l.bf16 %v295_v14  ;;  %v297_v19 = vld [vmem:[%s2833_s30 + $0x8] sm:$0xff]   ;;  %v314_v20 = vunpack.c.h.bf16 %v295_v14  ;;  %v323_v22 = vunpack.c.l.bf16 %v2844_v16  ;;  %v324_v23 = vunpack.c.h.bf16 %v2844_v16  ;;  %v2861_v33 = vld [vmem:[%s2833_s30 + $0x30] sm:$0xff]   ;;  %v2014_v54 = vld [vmem:[%s2833_s30 + $0x18] sm:$0xff]  }
  0x27   : > { %v2348_v17 = vpack.i.bf16 %v318_v12, %v317_v11  ;;  %v2353_v21 = vpack.i.bf16 %v320_v15, %v319_v13  ;;  %v315_v26 = vunpack.c.l.bf16 %v297_v19  ;;  %v316_v27 = vunpack.c.h.bf16 %v297_v19  ;;  %v2010_v34 = vld [vmem:[%s2833_s30 + $0x8] sm:$0xff]   ;;  %v2012_v45 = vld [vmem:[%s2833_s30 + $0x10] sm:$0xff]   ;;  %2186 = vmatmul.mubr.msk.bf16.vlgmr.msra.gmra.mrb[0].mxu0 %vm523_vm2, %v297_v19  ;;  %v2064_v61 = vld [vmem:[%s2833_s30 + $0x18] sm:$0xff]  }
  0x28   : > { %v2338_v25 = vpack.i.bf16 %v314_v20, %v313_v18  ;;  %v2363_v29 = vpack.i.bf16 %v324_v23, %v323_v22  ;;  %v327_v30 = vunpack.c.l.bf16 %v2851_v24  ;;  %v328_v31 = vunpack.c.h.bf16 %v2851_v24  ;;  %v2871_v43 = vld [vmem:[%s2833_s30 + $0x28] sm:$0xff]   ;;  %v2062_v46 = vld [vmem:[%s2833_s30 + $0x10] sm:$0xff]   ;;  %2189 = vmatprep.mubr.msk.bf16.mxu0 %vm523_vm2, %v299_v9  ;;  %2202 = vmatpush3.bf16.msra.mxu0 %v2825_v8  ;;  %v2016_v62 = vld [vmem:[%s2833_s30 + $0x20] sm:$0xff]  }
  0x29   : > { %2349 = vrot.lane.b32.xlu1 %v2348_v17, %s2698_s15  ;;  %v2343_v32 = vpack.i.bf16 %v316_v27, %v315_v26  ;;  %v321_v35 = vunpack.c.l.bf16 %v2854_v28  ;;  %v322_v36 = vunpack.c.h.bf16 %v2854_v28  ;;  %v325_v37 = vunpack.c.l.bf16 %v2861_v33  ;;  %v2874_v44 = vld [vmem:[%s2833_s30 + $0x28] sm:$0xff]   ;;  %2167 = vmatprep.mubr.msk.bf16.mxu1 %vm523_vm2, %v2010_v34  ;;  %v2020_v7 = vld [vmem:[%s2833_s30 + $0x30] sm:$0xff]   ;;  %v2022_v11 = vld [vmem:[%s2833_s30 + $0x38] sm:$0xff]  }
  0x2a   : > { %2339 = vrot.lane.b32.xlu0 %v2338_v25, %s2698_s15  ;;  %v326_v38 = vunpack.c.h.bf16 %v2861_v33  ;;  %v2373_v39 = vpack.i.bf16 %v328_v31, %v327_v30  ;;  %v821_v40 = vunpack.c.l.bf16 %v2010_v34  ;;  %v822_v41 = vunpack.c.h.bf16 %v2010_v34  ;;  %v2884_v53 = vld [vmem:[%s2833_s30 + $0x48] sm:$0xff]   ;;  %2168 = vmatmul.mubr.msk.bf16.vlgmr.msra.gmra.mrb[0].mxu1 %vm523_vm2, %v2012_v45  ;;  %v2070_v15 = vld [vmem:[%s2833_s30 + $0x30] sm:$0xff]   ;;  %v2024_v17 = vld [vmem:[%s2833_s30 + $0x40] sm:$0xff]  }
  0x2b   : > { %v2358_v42 = vpack.i.bf16 %v322_v36, %v321_v35  ;;  %v830_v48 = vunpack.c.h.bf16 %v2871_v43  ;;  %v1177_v49 = vunpack.c.h.bf16 %v2874_v44  ;;  %v823_v51 = vunpack.c.l.bf16 %v2012_v45  ;;  %2171 = vmatprep.mubr.msk.bf16.mxu1 %vm523_vm2, %v2014_v54  ;;  %2220 = vmatpush3.bf16.msra.mxu1 %v2823_v6  ;;  %v2066_v6 = vld [vmem:[%s2833_s30 + $0x20] sm:$0xff]   ;;  %v2072_v25 = vld [vmem:[%s2833_s30 + $0x38] sm:$0xff]  }
  0x2c   : > { %v2368_v47 = vpack.i.bf16 %v326_v38, %v325_v37  ;;  %v2378_v50 = vpack.i.bf16 %v822_v41, %v821_v40  ;;  %v1170_v52 = vunpack.c.l.bf16 %v2062_v46  ;;  %v1184_v56 = vunpack.c.l.bf16 %v2884_v53  ;;  %v2074_v26 = vld [vmem:[%s2833_s30 + $0x40] sm:$0xff]   ;;  %s2114_s30 = sshll.u32 %s2683_s22, 1 }
  0x2d   : > { %2354 = vrot.lane.b32.xlu1 %v2353_v21, %s2698_s15  ;;  %v2418_v55 = vpack.i.bf16 %v830_v48, %v1177_v49  ;;  %v1185_v57 = vunpack.c.h.bf16 %v2884_v53  ;;  %v824_v59 = vunpack.c.h.bf16 %v2012_v45  ;;  %v1171_v60 = vunpack.c.h.bf16 %v2062_v46  ;;  %s3273_s22 = sadd.s32 %s2679_s21, %s2114_s30 }
  0x2e   : > { %2344 = vrot.lane.b32.xlu0 %v2343_v32, %s2698_s15  ;;  %v2383_v58 = vpack.i.bf16 %v1170_v52, %v823_v51  ;;  %v825_v1 = vunpack.c.l.bf16 %v2014_v54  ;;  %v1172_v2 = vunpack.c.l.bf16 %v2064_v61  ;;  %v826_v4 = vunpack.c.h.bf16 %v2014_v54  ;;  %s2115_s21 = sshll.u32 %s3273_s22, 7 }
  0x2f   : > { %v2453_v63 = vpack.i.bf16 %v1185_v57, %v1184_v56  ;;  %v2388_v0 = vpack.i.bf16 %v824_v59, %v1171_v60  ;;  %2190 = vmatmul.mubr.msk.bf16.gmra.mrb[4].mxu0 %vm523_vm2, %v2838_v10  ;;  %v1173_v5 = vunpack.c.h.bf16 %v2064_v61  ;;  %v827_v9 = vunpack.c.l.bf16 %v2016_v62  ;;  %s3299_s14 = scalar_lea.hbm %s3460_s3, %s2115_s21 }
  0x30   : > { %2203 = vmatprep.mubr.msk.bf16.mxu0 %vm523_vm2, %v2062_v46  ;;  %v2393_v3 = vpack.i.bf16 %v825_v1, %v1172_v2  ;;  %v1174_v10 = vunpack.c.l.bf16 %v2066_v6  ;;  %v828_v13 = vunpack.c.h.bf16 %v2016_v62  ;;  %v1175_v14 = vunpack.c.h.bf16 %v2066_v6 }
  0x31   : > { %2364 = vrot.lane.b32.xlu1 %v2363_v29, %s2698_s15  ;;  %v2398_v8 = vpack.i.bf16 %v826_v4, %v1173_v5  ;;  %v829_v19 = vunpack.c.l.bf16 %v2871_v43  ;;  %v1176_v20 = vunpack.c.l.bf16 %v2874_v44  ;;  %v831_v22 = vunpack.c.l.bf16 %v2020_v7 }
  0x32   : > { %2359 = vrot.lane.b32.xlu0 %v2358_v42, %s2698_s15  ;;  %2172 = vmatmul.mubr.msk.bf16.gmra.mrb[4].mxu1 %vm523_vm2, %v2016_v62  ;;  %v2403_v12 = vpack.i.bf16 %v827_v9, %v1174_v10  ;;  %v2408_v18 = vpack.i.bf16 %v828_v13, %v1175_v14  ;;  %v1178_v23 = vunpack.c.l.bf16 %v2070_v15  ;;  %v832_v29 = vunpack.c.h.bf16 %v2020_v7 }
  0x33   : > { %2175 = vmatprep.mubr.msk.bf16.mxu1 %vm523_vm2, %v2871_v43  ;;  %v2413_v21 = vpack.i.bf16 %v829_v19, %v1176_v20  ;;  %v1179_v30 = vunpack.c.h.bf16 %v2070_v15  ;;  %v833_v32 = vunpack.c.l.bf16 %v2022_v11  ;;  %v1180_v34 = vunpack.c.l.bf16 %v2072_v25 }
  0x34   : > { %v2423_v27 = vpack.i.bf16 %v831_v22, %v1178_v23  ;;  %v834_v35 = vunpack.c.h.bf16 %v2022_v11  ;;  %v1181_v36 = vunpack.c.h.bf16 %v2072_v25  ;;  %v835_v38 = vunpack.c.l.bf16 %v2024_v17 }
  0x35   : > { %2374 = vrot.lane.b32.xlu1 %v2373_v39, %s2698_s15  ;;  %v2428_v31 = vpack.i.bf16 %v832_v29, %v1179_v30  ;;  %v1182_v39 = vunpack.c.l.bf16 %v2074_v26  ;;  %v1183_v40 = vunpack.c.h.bf16 %v2074_v26 }
  0x36   : > { %2369 = vrot.lane.b32.xlu0 %v2368_v47, %s2698_s15  ;;  %v2438_v37 = vpack.i.bf16 %v834_v35, %v1181_v36 }
  0x37   : > { %2204 = vmatmul.mubr.msk.bf16.vlgmr.msra.gmra.mrb[0].mxu0 %vm523_vm2, %v2064_v61 }
  0x38   : > { %2207 = vmatprep.mubr.msk.bf16.mxu0 %vm523_vm2, %v2066_v6 }
  0x39   : > { %2379 = vrot.lane.b32.xlu1 %v2378_v50, %s2698_s15 }
  0x3a   : > { %2419 = vrot.lane.b32.xlu0 %v2418_v55, %s2698_s15  ;;  %2176 = vmatmul.mubr.msk.bf16.gmra.mrb[8].mxu1 %vm523_vm2, %v2020_v7 }
  0x3b   : > { %2179 = vmatprep.mubr.msk.bf16.mxu1 %vm523_vm2, %v2022_v11 }
  0x3d   : > { %2384 = vrot.lane.b32.xlu1 %v2383_v58, %s2698_s15 }
  0x3e   : > { %2454 = vrot.lane.b32.xlu0 %v2453_v63, %s2698_s15 }
  0x3f   : > { %2208 = vmatmul.mubr.msk.bf16.gmra.mrb[4].mxu0 %vm523_vm2, %v2874_v44 }
  0x40   : > { %2211 = vmatprep.mubr.msk.bf16.mxu0 %vm523_vm2, %v2070_v15 }
  0x41   : > { %2389 = vrot.lane.b32.xlu1 %v2388_v0, %s2698_s15 }
  0x42   : > { %2180 = vmatmul.mubr.msk.bf16.gmra.mrb[12].mxu1 %vm523_vm2, %v2024_v17 }
  0x43   : > { %2193 = vmatprep.mubr.msk.bf16.mxu1 %vm523_vm2, %v2854_v28  ;;  %v2433_v28 = vpack.i.bf16 %v833_v32, %v1180_v34 }
  0x45   : > { %2394 = vrot.lane.b32.xlu1 %v2393_v3, %s2698_s15 }
  0x47   : > { %2212 = vmatmul.mubr.msk.bf16.gmra.mrb[8].mxu0 %vm523_vm2, %v2072_v25 }
  0x48   : > { %2215 = vmatprep.mubr.msk.bf16.mxu0 %vm523_vm2, %v2074_v26 }
  0x49   : > { %2399 = vrot.lane.b32.xlu1 %v2398_v8, %s2698_s15 }
  0x4a   : > { %2194 = vmatmul.mubr.msk.bf16.vlgmr.msra.gmra.mrb[8].mxu1 %vm523_vm2, %v2844_v16  ;;  %v2443_v16 = vpack.i.bf16 %v835_v38, %v1182_v39 }
  0x4b   : > { %2197 = vmatprep.mubr.msk.bf16.mxu1 %vm523_vm2, %v2861_v33  ;;  %v836_v33 = vunpack.c.h.bf16 %v2024_v17 }
  0x4d   : > { %2404 = vrot.lane.b32.xlu1 %v2403_v12, %s2698_s15  ;;  %v2448_v41 = vpack.i.bf16 %v836_v33, %v1183_v40 }
  0x4f   : > { %2216 = vmatmul.mubr.msk.bf16.gmra.mrb[12].mxu0 %vm523_vm2, %v2884_v53 }
  0x51   : > { %2409 = vrot.lane.b32.xlu1 %v2408_v18, %s2698_s15 }
  0x52   : > { %2198 = vmatmul.mubr.msk.bf16.gmra.mrb[12].mxu1 %vm523_vm2, %v2851_v24 }
  0x55   : > { %2414 = vrot.lane.b32.xlu1 %v2413_v21, %s2698_s15 }
  0x59   : > { %2424 = vrot.lane.b32.xlu1 %v2423_v27, %s2698_s15 }
  0x5d   : > { %2429 = vrot.lane.b32.xlu1 %v2428_v31, %s2698_s15 }
  0x61   : > { %2434 = vrot.lane.b32.xlu1 %v2433_v28, %s2698_s15 }
  0x65   : > { %2439 = vrot.lane.b32.xlu1 %v2438_v37, %s2698_s15 }
  0x69   : > { %2444 = vrot.lane.b32.xlu1 %v2443_v16, %s2698_s15 }
  0x6d   : > { %2449 = vrot.lane.b32.xlu1 %v2448_v41, %s2698_s15  ;;  %s2005_s15 = sshll.u32 %s3253_s17, 3 }
  0x6e   : > { %s262_s8 = scalar_lea.vmem [#allocation2], %s2005_s15  ;;  %s2699_s15 = smov [#allocation2]  }
  0x6f   : > { %s1795_s9 = sshll.u32 %s262_s8, 4  ;;  %s2545_s21 = sshll.u32 %s2699_s15, 4  ;;  %s3301_s9 = int_to_ptr.vmem [resolvable:$true] %s1795_s9  ;;  %s2546_s21 = int_to_ptr.vmem [resolvable:$false] %s2545_s21 }
  0x70   : > { %s2541_s30 = scalar_lea.vmem %s3301_s9, 128  ;;  %s2547_s10 = scalar_lea.vmem %s2546_s21, 256 }
  0x71   : > { %p2542_p1 = scmp.ne.s32.totalorder %s3301_s9, %s2541_s30  ;;  %p2548_p5 = scmp.lt.s32.totalorder %s3301_s9, %s2546_s21 }
  0x72   : > { %p2549_p6 = scmp.lt.s32.totalorder %s2547_s10, %s2541_s30 }
  0x73   : > { %p2543_p2 = pnand %p2542_p1, %p2785_p3 }
  0x74   : > { %p2550_p7 = por %p2549_p6, %p2548_p5 }
  0x75   : > { %p2544_p4 = pneg %p2543_p2 }
  0x77   : > { %p2551_p9 = pnand %p2550_p7, %p2544_p4 }
  0x9b   : > { %v2950_v42 = vpop.permute.xlu1 %2349 }
  0x9c   : > { %v2340_v43 = vpop.permute.xlu0 %2339  ;;  %v2351_v4 = vunpack.i.l.bf16 %v2950_v42  ;;  %v2352_v21 = vunpack.i.h.bf16 %v2950_v42 }
  0x9d   : > { %v2342_v45 = vunpack.i.h.bf16 %v2340_v43  ;;  %v2341_v46 = vunpack.i.l.bf16 %v2340_v43 }
  0x9e   : > { %v406_v10 = vsel %vm393_vm3, %v2351_v4, 0.0  ;;  %v409_v29 = vsel %vm393_vm3, %v2352_v21, 0.0 }
  0x9f   : > { %v2952_v44 = vpop.permute.xlu1 %2354  ;;  %v397_v24 = vsel %vm393_vm3, %v2342_v45, 0.0  ;;  %v394_v47 = vsel %vm393_vm3, %v2341_v46, 0.0 }
  0xa0   : > { %398 = vadd.xlane.f32.xlu1 %v397_v24  ;;  %395 = vadd.xlane.f32.xlu0 %v394_v47  ;;  %v2345_v52 = vpop.permute.xlu0 %2344  ;;  %v2356_v22 = vunpack.i.l.bf16 %v2952_v44  ;;  %v2357_v39 = vunpack.i.h.bf16 %v2952_v44 }
  0xa1   : > { %v2346_v57 = vunpack.i.l.bf16 %v2345_v52  ;;  %v2347_v5 = vunpack.i.h.bf16 %v2345_v52 }
  0xa2   : > { %v412_v27 = vsel %vm393_vm3, %v2356_v22, 0.0  ;;  %v415_v42 = vsel %vm393_vm3, %v2357_v39, 0.0 }
  0xa3   : > { %v2956_v48 = vpop.permute.xlu1 %2364  ;;  %v400_v63 = vsel %vm393_vm3, %v2346_v57, 0.0  ;;  %v403_v11 = vsel %vm393_vm3, %v2347_v5, 0.0 }
  0xa4   : > { %v2360_v20 = vpop.permute.xlu0 %2359 }
  0xa5   : > { %v2361_v35 = vunpack.i.l.bf16 %v2360_v20  ;;  %v2362_v52 = vunpack.i.h.bf16 %v2360_v20 }
  0xa7   : > { %v2958_v49 = vpop.permute.xlu1 %2374  ;;  %v418_v41 = vsel %vm393_vm3, %v2361_v35, 0.0  ;;  %v421_v57 = vsel %vm393_vm3, %v2362_v52, 0.0 }
  0xa8   : > { %v2978_v30 = vpop.permute.xlu0 %2369 }
  0xab   : > { %v2380_v50 = vpop.permute.xlu1 %2379 }
  0xac   : > { %v2381_v51 = vunpack.i.l.bf16 %v2380_v50  ;;  %v2382_v53 = vunpack.i.h.bf16 %v2380_v50  ;;  %v2420_v38 = vpop.permute.xlu0 %2419 }
  0xad   : > { %v2421_v40 = vunpack.i.l.bf16 %v2420_v38  ;;  %v2422_v45 = vunpack.i.h.bf16 %v2420_v38 }
  0xae   : > { %v901_v54 = vsel %vm393_vm3, %v2381_v51, 0.0  ;;  %v904_v59 = vsel %vm393_vm3, %v2382_v53, 0.0  ;;  %v2366_v51 = vunpack.i.l.bf16 %v2956_v48 }
  0xaf   : > { %v2385_v55 = vpop.permute.xlu1 %2384  ;;  %902 = vadd.xlane.f32.xlu0 %v901_v54  ;;  %v1271_v46 = vsel %vm393_vm3, %v2421_v40, 0.0  ;;  %v928_v44 = vsel %vm393_vm3, %v2422_v45, 0.0 }
  0xb0   : > { %v2386_v56 = vunpack.i.l.bf16 %v2385_v55  ;;  %v2387_v0 = vunpack.i.h.bf16 %v2385_v55 }
  0xb2   : > { %v907_v58 = vsel %vm393_vm3, %v2386_v56, 0.0  ;;  %v1250_v6 = vsel %vm393_vm3, %v2387_v0, 0.0  ;;  %v424_v56 = vsel %vm393_vm3, %v2366_v51, 0.0 }
  0xb3   : > { %v2390_v60 = vpop.permute.xlu1 %2389  ;;  %908 = vadd.xlane.f32.xlu1 %v907_v58  ;;  %905 = vadd.xlane.f32.xlu0 %v904_v59 }
  0xb4   : > { %v2392_v61 = vunpack.i.h.bf16 %v2390_v60  ;;  %v2391_v62 = vunpack.i.l.bf16 %v2390_v60 }
  0xb6   : > { %v1253_v1 = vsel %vm393_vm3, %v2391_v62, 0.0  ;;  %v910_v3 = vsel %vm393_vm3, %v2392_v61, 0.0 }
  0xb7   : > { %1254 = vadd.xlane.f32.xlu1 %v1253_v1  ;;  %401 = vadd.xlane.f32.xlu0 %v400_v63  ;;  %v2395_v2 = vpop.permute.xlu1 %2394  ;;  %v2367_v1 = vunpack.i.h.bf16 %v2956_v48 }
  0xb8   : > { %v2396_v8 = vunpack.i.l.bf16 %v2395_v2  ;;  %v2397_v17 = vunpack.i.h.bf16 %v2395_v2  ;;  %v2371_v2 = vunpack.i.l.bf16 %v2978_v30 }
  0xba   : > { %v1256_v15 = vsel %vm393_vm3, %v2396_v8, 0.0  ;;  %v913_v23 = vsel %vm393_vm3, %v2397_v17, 0.0 }
  0xbb   : > { %911 = vadd.xlane.f32.xlu1 %v910_v3  ;;  %1251 = vadd.xlane.f32.xlu0 %v1250_v6  ;;  %v2400_v7 = vpop.permute.xlu1 %2399  ;;  %v430_v6 = vsel %vm393_vm3, %v2371_v2, 0.0 }
  0xbc   : > { %v2401_v9 = vunpack.i.l.bf16 %v2400_v7  ;;  %v2402_v13 = vunpack.i.h.bf16 %v2400_v7  ;;  %v427_v7 = vsel %vm393_vm3, %v2367_v1, 0.0 }
  0xbe   : > { %v1259_v14 = vsel %vm393_vm3, %v2401_v9, 0.0  ;;  %v916_v18 = vsel %vm393_vm3, %v2402_v13, 0.0 }
  0xbf   : > { %407 = vadd.xlane.f32.xlu1 %v406_v10  ;;  %404 = vadd.xlane.f32.xlu0 %v403_v11  ;;  %v2405_v12 = vpop.permute.xlu1 %2404 }
  0xc0   : > { %v2406_v25 = vunpack.i.l.bf16 %v2405_v12  ;;  %v2407_v28 = vunpack.i.h.bf16 %v2405_v12 }
  0xc2   : > { %v1262_v34 = vsel %vm393_vm3, %v2406_v25, 0.0  ;;  %v919_v16 = vsel %vm393_vm3, %v2407_v28, 0.0 }
  0xc3   : > { %1260 = vadd.xlane.f32.xlu1 %v1259_v14  ;;  %1257 = vadd.xlane.f32.xlu0 %v1256_v15  ;;  %v2410_v19 = vpop.permute.xlu1 %2409  ;;  %v2376_v14 = vunpack.i.l.bf16 %v2958_v49  ;;  %v2372_v15 = vunpack.i.h.bf16 %v2978_v30  ;;  %v2377_v30 = vunpack.i.h.bf16 %v2958_v49 }
  0xc4   : > { %v2411_v26 = vunpack.i.l.bf16 %v2410_v19  ;;  %v2412_v31 = vunpack.i.h.bf16 %v2410_v19 }
  0xc5   : > { %v436_v20 = vsel %vm393_vm3, %v2376_v14, 0.0  ;;  %v433_v21 = vsel %vm393_vm3, %v2372_v15, 0.0  ;;  %v439_v35 = vsel %vm393_vm3, %v2377_v30, 0.0 }
  0xc6   : > { %v1265_v32 = vsel %vm393_vm3, %v2411_v26, 0.0  ;;  %v922_v36 = vsel %vm393_vm3, %v2412_v31, 0.0 }
  0xc7   : > { %917 = vadd.xlane.f32.xlu1 %v916_v18  ;;  %914 = vadd.xlane.f32.xlu0 %v913_v23  ;;  %v2415_v37 = vpop.permute.xlu1 %2414 }
  0xc8   : > { %v2416_v33 = vunpack.i.l.bf16 %v2415_v37  ;;  %v2417_v47 = vunpack.i.h.bf16 %v2415_v37 }
  0xca   : > { %v1268_v24 = vsel %vm393_vm3, %v2416_v33, 0.0  ;;  %v925_v53 = vsel %vm393_vm3, %v2417_v47, 0.0 }
  0xcb   : > { %413 = vadd.xlane.f32.xlu1 %v412_v27  ;;  %410 = vadd.xlane.f32.xlu0 %v409_v29  ;;  %v2425_v43 = vpop.permute.xlu1 %2424  ;;  %v2455_v27 = vpop.permute.xlu0 %2454 }
  0xcc   : > { %v2426_v54 = vunpack.i.l.bf16 %v2425_v43  ;;  %v2427_v62 = vunpack.i.h.bf16 %v2425_v43  ;;  %v2457_v31 = vunpack.i.h.bf16 %v2455_v27 }
  0xce   : > { %v1274_v61 = vsel %vm393_vm3, %v2426_v54, 0.0  ;;  %v931_v3 = vsel %vm393_vm3, %v2427_v62, 0.0  ;;  %v1295_v28 = vsel %vm393_vm3, %v2457_v31, 0.0 }
  0xcf   : > { %1266 = vadd.xlane.f32.xlu1 %v1265_v32  ;;  %1263 = vadd.xlane.f32.xlu0 %v1262_v34  ;;  %v2430_v50 = vpop.permute.xlu1 %2429  ;;  %v2456_v34 = vunpack.i.l.bf16 %v2455_v27 }
  0xd0   : > { %v2431_v55 = vunpack.i.l.bf16 %v2430_v50  ;;  %v2432_v59 = vunpack.i.h.bf16 %v2430_v50 }
  0xd2   : > { %v1277_v60 = vsel %vm393_vm3, %v2431_v55, 0.0  ;;  %v934_v63 = vsel %vm393_vm3, %v2432_v59, 0.0 }
  0xd3   : > { %923 = vadd.xlane.f32.xlu1 %v922_v36  ;;  %920 = vadd.xlane.f32.xlu0 %v919_v16  ;;  %v2435_v58 = vpop.permute.xlu1 %2434  ;;  %v1292_v36 = vsel %vm393_vm3, %v2456_v34, 0.0 }
  0xd4   : > { %v2436_v4 = vunpack.i.l.bf16 %v2435_v58  ;;  %v2437_v11 = vunpack.i.h.bf16 %v2435_v58 }
  0xd6   : > { %v1280_v48 = vsel %vm393_vm3, %v2436_v4, 0.0  ;;  %v937_v17 = vsel %vm393_vm3, %v2437_v11, 0.0 }
  0xd7   : > { %419 = vadd.xlane.f32.xlu1 %v418_v41  ;;  %416 = vadd.xlane.f32.xlu0 %v415_v42  ;;  %v2440_v0 = vpop.permute.xlu1 %2439 }
  0xd8   : > { %v2441_v5 = vunpack.i.l.bf16 %v2440_v0  ;;  %v2442_v9 = vunpack.i.h.bf16 %v2440_v0 }
  0xda   : > { %v1283_v10 = vsel %vm393_vm3, %v2441_v5, 0.0  ;;  %v940_v12 = vsel %vm393_vm3, %v2442_v9, 0.0 }
  0xdb   : > { %1272 = vadd.xlane.f32.xlu1 %v1271_v46  ;;  %1269 = vadd.xlane.f32.xlu0 %v1268_v24  ;;  %v2445_v8 = vpop.permute.xlu1 %2444 }
  0xdc   : > { %v2446_v18 = vunpack.i.l.bf16 %v2445_v8  ;;  %v2447_v26 = vunpack.i.h.bf16 %v2445_v8 }
  0xde   : > { %v1286_v25 = vsel %vm393_vm3, %v2446_v18, 0.0  ;;  %v943_v32 = vsel %vm393_vm3, %v2447_v26, 0.0 }
  0xdf   : > { %929 = vadd.xlane.f32.xlu1 %v928_v44  ;;  %926 = vadd.xlane.f32.xlu0 %v925_v53  ;;  %v2450_v13 = vpop.permute.xlu1 %2449 }
  0xe0   : > { %v2451_v19 = vunpack.i.l.bf16 %v2450_v13  ;;  %v2452_v22 = vunpack.i.h.bf16 %v2450_v13 }
  0xe2   : > { %v1289_v23 = vsel %vm393_vm3, %v2451_v19, 0.0  ;;  %v946_v29 = vsel %vm393_vm3, %v2452_v22, 0.0 }
  0xe3   : > { %425 = vadd.xlane.f32.xlu1 %v424_v56  ;;  %422 = vadd.xlane.f32.xlu0 %v421_v57 }
  0xe7   : > { %1278 = vadd.xlane.f32.xlu1 %v1277_v60  ;;  %1275 = vadd.xlane.f32.xlu0 %v1274_v61 }
  0xeb   : > { %935 = vadd.xlane.f32.xlu1 %v934_v63  ;;  %932 = vadd.xlane.f32.xlu0 %v931_v3 }
  0xef   : > { %431 = vadd.xlane.f32.xlu1 %v430_v6  ;;  %428 = vadd.xlane.f32.xlu0 %v427_v7 }
  0xf3   : > { %1284 = vadd.xlane.f32.xlu1 %v1283_v10  ;;  %1281 = vadd.xlane.f32.xlu0 %v1280_v48 }
  0xf7   : > { %941 = vadd.xlane.f32.xlu1 %v940_v12  ;;  %938 = vadd.xlane.f32.xlu0 %v937_v17 }
  0xfb   : > { %437 = vadd.xlane.f32.xlu1 %v436_v20  ;;  %434 = vadd.xlane.f32.xlu0 %v433_v21 }
  0xfd   : > { %v2169_v37 = vpop.f32.mrb[0].mxu1 }
  0xfe   : > { %v589_v38 = vpop.f32.mrb[1].mxu1 }
  0xff   : > { %1290 = vadd.xlane.f32.xlu1 %v1289_v23  ;;  %1287 = vadd.xlane.f32.xlu0 %v1286_v25  ;;  %v2170_v39 = vpop.f32.mrb[2].mxu1 }
 0x100   : > { %v592_v16 = vpop.f32.mrb[3].mxu1 }
 0x103   : > { %947 = vadd.xlane.f32.xlu1 %v946_v29  ;;  %944 = vadd.xlane.f32.xlu0 %v943_v32 }
 0x105   : > { %v2173_v49 = vpop.f32.mrb[4].mxu1 }
 0x106   : > { %v605_v33 = vpop.f32.mrb[5].mxu1 }
 0x107   : > { %1296 = vadd.xlane.f32.xlu1 %v1295_v28  ;;  %440 = vadd.xlane.f32.xlu0 %v439_v35  ;;  %v2174_v40 = vpop.f32.mrb[6].mxu1 }
 0x108   : > { %v608_v41 = vpop.f32.mrb[7].mxu1 }
 0x10a   : > { %v2205_v42 = vpop.f32.mrb[0].mxu0 }
 0x10b   : > { %1293 = vadd.xlane.f32.xlu0 %v1292_v36  ;;  %v3018_v43 = vadd.f32 %v2205_v42, %v2169_v37  ;;  %v1091_v45 = vpop.f32.mrb[1].mxu0 }
 0x10c   : > { %v3020_v46 = vadd.f32 %v1091_v45, %v589_v38  ;;  %v2206_v24 = vpop.f32.mrb[2].mxu0 }
 0x10d   : > { %v3022_v47 = vadd.f32 %v2206_v24, %v2170_v39  ;;  %v1094_v44 = vpop.f32.mrb[3].mxu0 }
 0x10e   : > { %v3024_v50 = vadd.f32 %v1094_v44, %v592_v16 }
 0x112   : > { %v2209_v51 = vpop.f32.mrb[4].mxu0 }
 0x113   : > { %v3026_v52 = vadd.f32 %v2209_v51, %v2173_v49  ;;  %v1107_v53 = vpop.f32.mrb[5].mxu0 }
 0x114   : > { %v3028_v54 = vadd.f32 %v1107_v53, %v605_v33  ;;  %v2210_v55 = vpop.f32.mrb[6].mxu0 }
 0x115   : > { %v3030_v56 = vadd.f32 %v2210_v55, %v2174_v40  ;;  %v1110_v57 = vpop.f32.mrb[7].mxu0 }
 0x116   : > { %v3032_v58 = vadd.f32 %v1110_v57, %v608_v41 }
 0x11a   : > { %v2213_v59 = vpop.f32.mrb[8].mxu0 }
 0x11b   : > { %v1123_v60 = vpop.f32.mrb[9].mxu0 }
 0x11c   : > { %v2214_v61 = vpop.f32.mrb[10].mxu0 }
 0x11d   : > { %v2195_v62 = vpop.f32.mrb[8].mxu1  ;;  %v1126_v63 = vpop.f32.mrb[11].mxu0 }
 0x11e   : > { %v3034_v0 = vadd.f32 %v2213_v59, %v2195_v62  ;;  %v790_v1 = vpop.f32.mrb[9].mxu1 }
 0x11f   : > { %v3036_v2 = vadd.f32 %v1123_v60, %v790_v1  ;;  %v2196_v3 = vpop.f32.mrb[10].mxu1 }
 0x120   : > { %v3038_v4 = vadd.f32 %v2214_v61, %v2196_v3  ;;  %v793_v5 = vpop.f32.mrb[11].mxu1 }
 0x121   : > { %v3040_v6 = vadd.f32 %v1126_v63, %v793_v5 }
 0x122   : > { %v2217_v7 = vpop.f32.mrb[12].mxu0 }
 0x123   : > { %v1139_v8 = vpop.f32.mrb[13].mxu0 }
 0x124   : > { %v2218_v9 = vpop.f32.mrb[14].mxu0 }
 0x125   : > { %v2199_v10 = vpop.f32.mrb[12].mxu1  ;;  %v1142_v48 = vpop.f32.mrb[15].mxu0 }
 0x126   : > { %v3042_v11 = vadd.f32 %v2217_v7, %v2199_v10  ;;  %v806_v12 = vpop.f32.mrb[13].mxu1 }
 0x127   : > { %v3044_v14 = vadd.f32 %v1139_v8, %v806_v12  ;;  %v2200_v15 = vpop.f32.mrb[14].mxu1 }
 0x128   : > { %v3046_v17 = vadd.f32 %v2218_v9, %v2200_v15  ;;  %v809_v18 = vpop.f32.mrb[15].mxu1 }
 0x129   : > { %v3048_v19 = vadd.f32 %v1142_v48, %v809_v18 }
 0x12d   : > { %v396_v13 = vpop.xlane.xlu0 %395  ;;  %v399_v20 = vpop.xlane.xlu1 %398 }
 0x13c   : > { %v903_v21 = vpop.xlane.xlu0 %902 }
 0x13d   : > { %v949_v30 = vadd.f32 %v903_v21, %v396_v13 }
 0x140   : > { %v909_v22 = vpop.xlane.xlu1 %908  ;;  %v906_v23 = vpop.xlane.xlu0 %905 }
 0x141   : > { %v950_v25 = vadd.f32 %v906_v23, %v399_v20 }
 0x144   : > { %v1255_v26 = vpop.xlane.xlu1 %1254  ;;  %v402_v27 = vpop.xlane.xlu0 %401 }
 0x145   : > { %v1299_v29 = vadd.f32 %v1255_v26, %v950_v25  ;;  %v951_v38 = vadd.f32 %v909_v22, %v402_v27 }
 0x147   : > { %v1347_v31 = vadd.f32 1e-08, %v1299_v29  ;;  %v1315_v53 = vmax.f32 %v1299_v29, 0.0 }
 0x148   : > { %v912_v32 = vpop.xlane.xlu1 %911  ;;  %v1252_v34 = vpop.xlane.xlu0 %1251 }
 0x149   : > { %2509 = vrcp.f32 %v1347_v31  ;;  %v1298_v28 = vadd.f32 %v1252_v34, %v949_v30  ;;  %v3060_v63 = vmin.f32 %v1315_v53, 1.0 }
 0x14b   : > { %v1346_v35 = vadd.f32 1e-08, %v1298_v28  ;;  %v1314_v1 = vmax.f32 %v1298_v28, 0.0 }
 0x14c   : > { %v408_v36 = vpop.xlane.xlu1 %407  ;;  %v405_v37 = vpop.xlane.xlu0 %404 }
 0x14d   : > { %2511 = vrcp.f32 %v1346_v35  ;;  %v952_v39 = vadd.f32 %v912_v32, %v405_v37  ;;  %v3067_v18 = vmin.f32 %v1314_v1, 1.0 }
 0x150   : > { %v1261_v16 = vpop.xlane.xlu1 %1260  ;;  %v1258_v49 = vpop.xlane.xlu0 %1257 }
 0x151   : > { %v3051_v33 = vadd.f32 %v1261_v16, %v952_v39  ;;  %v3053_v40 = vadd.f32 %v1258_v49, %v951_v38 }
 0x153   : > { %v2510_v41 = vpop.eup %2509  ;;  %v1349_v42 = vadd.f32 1e-08, %v3051_v33  ;;  %v1348_v45 = vadd.f32 1e-08, %v3053_v40  ;;  %v1317_v32 = vmax.f32 %v3051_v33, 0.0  ;;  %v1316_v37 = vmax.f32 %v3053_v40, 0.0 }
 0x154   : > { %v1379_v24 = vmul.f32 %v2510_v41, %v1347_v31  ;;  %v918_v44 = vpop.xlane.xlu1 %917  ;;  %v915_v51 = vpop.xlane.xlu0 %914 }
 0x155   : > { %2513 = vrcp.f32 %v1349_v42  ;;  %v953_v7 = vadd.f32 %v915_v51, %v408_v36 }
 0x156   : > { %v1395_v55 = vsub.f32 2.0, %v1379_v24  ;;  %2515 = vrcp.f32 %v1348_v45 }
 0x157   : > { %v2512_v57 = vpop.eup %2511 }
 0x158   : > { %v1378_v59 = vmul.f32 %v2512_v57, %v1346_v35  ;;  %v3058_v60 = vpop.xlane.xlu1 %413  ;;  %v411_v61 = vpop.xlane.xlu0 %410  ;;  %v1411_v62 = vmul.f32 %v2510_v41, %v1395_v55  ;;  %v3091_v55 = vmin.f32 %v1316_v37, 1.0 }
 0x159   : > { %v954_v8 = vadd.f32 %v918_v44, %v411_v61 }
 0x15a   : > { %v1394_v3 = vsub.f32 2.0, %v1378_v59  ;;  %v1427_v5 = vmul.f32 9.0, %v1411_v62 }
 0x15c   : > { %v1410_v9 = vmul.f32 %v2512_v57, %v1394_v3  ;;  %v1443_v10 = vmul.f32 %v1427_v5, %v3060_v63  ;;  %v1267_v48 = vpop.xlane.xlu1 %1266  ;;  %v1264_v12 = vpop.xlane.xlu0 %1263 }
 0x15d   : > { %v3063_v13 = vadd.f32 %v1267_v48, %v954_v8  ;;  %v3065_v15 = vadd.f32 %v1264_v12, %v953_v7  ;;  %v1571_v8 = vlaneseq }
 0x15e   : > { %v1426_v20 = vmul.f32 9.0, %v1410_v9  ;;  %v1459_v21 = vmul.f32 %v3024_v50, %v1443_v10 }
 0x15f   : > { %v2514_v22 = vpop.eup %2513  ;;  %v1351_v23 = vadd.f32 1e-08, %v3063_v13  ;;  %v1350_v25 = vadd.f32 1e-08, %v3065_v15 }
 0x160   : > { %v2516_v26 = vpop.eup %2515  ;;  %v1381_v27 = vmul.f32 %v2514_v22, %v1349_v42  ;;  %v1442_v29 = vmul.f32 %v1426_v20, %v3067_v18  ;;  %v2123_v30 = vpack.c.bf16 %v1459_v21, %v1459_v21  ;;  %v924_v31 = vpop.xlane.xlu1 %923  ;;  %v1705_v36 = vmul.f32 %v1459_v21, %v1459_v21 }
 0x161   : > { %v921_v50 = vpop.xlane.xlu0 %920  ;;  %v1380_v34 = vmul.f32 %v2516_v26, %v1348_v45  ;;  %2517 = vrcp.f32 %v1351_v23  ;;  %v1666_v39 = vsel %vm1664_vm5, %v1459_v21, 0.0 }
 0x162   : > { %v1397_v28 = vsub.f32 2.0, %v1381_v27  ;;  %v1458_v35 = vmul.f32 %v3020_v46, %v1442_v29  ;;  %1540 = vst.msk [vmem:[%s3073_s16 + $0x4] sm:$0xf] %vm1538_vm4, %v2123_v30  ;;  %2519 = vrcp.f32 %v1350_v25  ;;  %v3085_v46 = vmin.f32 %v1317_v32, 1.0 }
 0x163   : > { %v1396_v38 = vsub.f32 2.0, %v1380_v34  ;;  %v1721_v40 = vsel %vm1664_vm5, %v1705_v36, 0.0  ;;  %v955_v10 = vadd.f32 %v921_v50, %v3058_v60  ;;  %v1572_v50 = vand.u32 127, %v1571_v8 }
 0x164   : > { %v2122_v16 = vpack.c.bf16 %v1458_v35, %v1458_v35  ;;  %v1665_v49 = vsel %vm1664_vm5, %v1458_v35, 0.0  ;;  %v1704_v41 = vmul.f32 %v1458_v35, %v1458_v35  ;;  %v1413_v33 = vmul.f32 %v2514_v22, %v1397_v28  ;;  %v420_v42 = vpop.xlane.xlu1 %419 }
 0x165   : > { %v417_v45 = vpop.xlane.xlu0 %416  ;;  %v1412_v24 = vmul.f32 %v2516_v26, %v1396_v38  ;;  %v1667_v44 = vadd.f32 %v1666_v39, %v1665_v49  ;;  %v1319_v39 = vmax.f32 %v3063_v13, 0.0 }
 0x166   : > { %1539 = vst.msk [vmem:[%s3073_s16] sm:$0xf] %vm1538_vm4, %v2122_v16  ;;  %v1720_v51 = vsel %vm1664_vm5, %v1704_v41, 0.0  ;;  %v1429_v53 = vmul.f32 9.0, %v1413_v33  ;;  %v956_v61 = vadd.f32 %v924_v31, %v417_v45 }
 0x167   : > { %v1428_v57 = vmul.f32 9.0, %v1412_v24  ;;  %v1722_v59 = vadd.f32 %v1721_v40, %v1720_v51  ;;  %v3118_v13 = vmin.f32 %v1319_v39, 1.0 }
 0x168   : > { %v1445_v62 = vmul.f32 %v1429_v53, %v3085_v46  ;;  %v1273_v1 = vpop.xlane.xlu1 %1272 }
 0x169   : > { %v1270_v3 = vpop.xlane.xlu0 %1269  ;;  %v1444_v5 = vmul.f32 %v1428_v57, %v3091_v55  ;;  %v3095_v7 = vadd.f32 %v1273_v1, %v956_v61  ;;  %v1574_v57 = vshrl.u32 %v1571_v8, 7 }
 0x16a   : > { %v1461_v9 = vmul.f32 %v3022_v47, %v1445_v62  ;;  %v3101_v29 = vadd.f32 %v1270_v3, %v955_v10 }
 0x16b   : > { %v2518_v48 = vpop.eup %2517  ;;  %v1460_v12 = vmul.f32 %v3018_v43, %v1444_v5  ;;  %v1353_v20 = vadd.f32 1e-08, %v3095_v7 }
 0x16c   : > { %v2520_v21 = vpop.eup %2519  ;;  %v2125_v22 = vpack.c.bf16 %v1461_v9, %v1461_v9  ;;  %v1707_v26 = vmul.f32 %v1461_v9, %v1461_v9  ;;  %v1383_v27 = vmul.f32 %v2518_v48, %v1351_v23  ;;  %v930_v30 = vpop.xlane.xlu1 %929  ;;  %v1318_v23 = vmax.f32 %v3065_v15, 0.0 }
 0x16d   : > { %v927_v31 = vpop.xlane.xlu0 %926  ;;  %v2124_v32 = vpack.c.bf16 %v1460_v12, %v1460_v12  ;;  %v1668_v47 = vsel %vm1664_vm5, %v1460_v12, 0.0  ;;  %v1706_v34 = vmul.f32 %v1460_v12, %v1460_v12  ;;  %v1382_v60 = vmul.f32 %v2520_v21, %v1350_v25 }
 0x16e   : > { %1542 = vst.msk [vmem:[%s3073_s16 + $0xc] sm:$0xf] %vm1538_vm4, %v2125_v22  ;;  %v1669_v43 = vadd.f32 %v1668_v47, %v1667_v44  ;;  %v1399_v28 = vsub.f32 2.0, %v1383_v27  ;;  %2521 = vrcp.f32 %v1353_v20  ;;  %v1670_v37 = vsel %vm1664_vm5, %v1461_v9, 0.0 }
 0x16f   : > { %1541 = vst.msk [vmem:[%s3073_s16 + $0x8] sm:$0xf] %vm1538_vm4, %v2124_v32  ;;  %v1723_v35 = vsel %vm1664_vm5, %v1706_v34, 0.0  ;;  %v1398_v36 = vsub.f32 2.0, %v1382_v60  ;;  %v1352_v25 = vadd.f32 1e-08, %v3101_v29  ;;  %v957_v51 = vadd.f32 %v927_v31, %v420_v42 }
 0x170   : > { %v1724_v38 = vadd.f32 %v1723_v35, %v1722_v59  ;;  %v3113_v16 = vpop.xlane.xlu1 %425  ;;  %v1725_v41 = vsel %vm1664_vm5, %v1707_v26, 0.0  ;;  %v1671_v45 = vadd.f32 %v1670_v37, %v1669_v43  ;;  %v1415_v44 = vmul.f32 %v2518_v48, %v1399_v28 }
 0x171   : > { %v423_v49 = vpop.xlane.xlu0 %422  ;;  %v1414_v33 = vmul.f32 %v2520_v21, %v1398_v36  ;;  %2523 = vrcp.f32 %v1352_v25  ;;  %v3116_v15 = vmin.f32 %v1318_v23, 1.0  ;;  %v1577_v59 = vadd.s32 4294967288, %v1572_v50 }
 0x172   : > { %v1726_v24 = vadd.f32 %v1725_v41, %v1724_v38  ;;  %v958_v53 = vadd.f32 %v930_v30, %v423_v49  ;;  %v1431_v61 = vmul.f32 9.0, %v1415_v44  ;;  %v3132_v12 = vsub.s32 %v1572_v50, %v1574_v57 }
 0x173   : > { %v1430_v40 = vmul.f32 9.0, %v1414_v33  ;;  %v3130_v8 = vsub.s32 %v1577_v59, %v1574_v57  ;;  %v1321_v21 = vmax.f32 %v3095_v7, 0.0  ;;  %v1320_v60 = vmax.f32 %v3101_v29, 0.0 }
 0x174   : > { %v1279_v62 = vpop.xlane.xlu1 %1278  ;;  %v1447_v10 = vmul.f32 %v1431_v61, %v3118_v13  ;;  %v1587_v41 = vrot.slane %v3091_v55, %v3132_v12  ;;  %v1576_v55 = vrot.slane %v3067_v18, %v3132_v12 }
 0x175   : > { %v1276_v1 = vpop.xlane.xlu0 %1275  ;;  %v1446_v3 = vmul.f32 %v1430_v40, %v3116_v15  ;;  %v3121_v5 = vadd.f32 %v1279_v62, %v958_v53  ;;  %v1591_v38 = vrot.slane %v3085_v46, %v3130_v8  ;;  %v1337_v33 = vmin.f32 %v1321_v21, 1.0 }
 0x176   : > { %v3123_v9 = vadd.f32 %v1276_v1, %v957_v51  ;;  %v1463_v22 = vmul.f32 %v3032_v58, %v1447_v10  ;;  %v1336_v44 = vmin.f32 %v1320_v60, 1.0  ;;  %v1581_v46 = vrot.slane %v3060_v63, %v3130_v8 }
 0x177   : > { %v1462_v48 = vmul.f32 %v3028_v54, %v1446_v3  ;;  %v3128_v42 = vadd.f32 1e-08, %v3121_v5  ;;  %v1323_v57 = vmax.f32 %v3121_v5, 0.0  ;;  %v1600_v63 = vrot.slane %v3118_v13, %v3130_v8 }
 0x178   : > { %v936_v26 = vpop.xlane.xlu1 %935  ;;  %v2522_v30 = vpop.eup %2521  ;;  %v3138_v47 = vadd.f32 1e-08, %v3123_v9  ;;  %v2127_v43 = vpack.c.bf16 %v1463_v22, %v1463_v22  ;;  %v1674_v7 = vsel %vm1664_vm5, %v1463_v22, 0.0  ;;  %v1709_v28 = vmul.f32 %v1463_v22, %v1463_v22 }
 0x179   : > { %v933_v27 = vpop.xlane.xlu0 %932  ;;  %v2126_v31 = vpack.c.bf16 %v1462_v48, %v1462_v48  ;;  %v1672_v32 = vsel %vm1664_vm5, %v1462_v48, 0.0  ;;  %v1708_v54 = vmul.f32 %v1462_v48, %v1462_v48  ;;  %v1385_v34 = vmul.f32 %v2522_v30, %v1353_v20 }
 0x17a   : > { %v1673_v50 = vadd.f32 %v1672_v32, %v1671_v45  ;;  %2525 = vrcp.f32 %v3128_v42  ;;  %1544 = vst.msk [vmem:[%s3073_s16 + $0x14] sm:$0xf] %vm1538_vm4, %v2127_v43  ;;  %v1729_v49 = vsel %vm1664_vm5, %v1709_v28, 0.0  ;;  %v959_v53 = vadd.f32 %v933_v27, %v3113_v16 }
 0x17b   : > { %1543 = vst.msk [vmem:[%s3073_s16 + $0x10] sm:$0xf] %vm1538_vm4, %v2126_v31  ;;  %v1727_v58 = vsel %vm1664_vm5, %v1708_v54, 0.0  ;;  %v2524_v35 = vpop.eup %2523  ;;  %v1401_v23 = vsub.f32 2.0, %v1385_v34  ;;  %2527 = vrcp.f32 %v3138_v47  ;;  %v1322_v59 = vmax.f32 %v3123_v9, 0.0 }
 0x17c   : > { %v1728_v36 = vadd.f32 %v1727_v58, %v1726_v24  ;;  %v3148_v20 = vadd.f32 %v1674_v7, %v1673_v50  ;;  %v3150_v29 = vpop.xlane.xlu1 %431  ;;  %v1384_v39 = vmul.f32 %v2524_v35, %v1352_v25  ;;  %v1592_v16 = vsel %vm1582_vm6, %v1591_v38, %v1587_v41 }
 0x17d   : > { %v429_v37 = vpop.xlane.xlu0 %428  ;;  %v1417_v45 = vmul.f32 %v2522_v30, %v1401_v23  ;;  %v1596_v5 = vrot.slane %v3116_v15, %v3132_v12  ;;  %v1609_v9 = vrot.slane %v1337_v33, %v3130_v8  ;;  %v1605_v21 = vrot.slane %v1336_v44, %v3132_v12 }
 0x17e   : > { %v3158_v24 = vadd.f32 %v1729_v49, %v1728_v36  ;;  %v1400_v51 = vsub.f32 2.0, %v1384_v39  ;;  %v960_v40 = vadd.f32 %v936_v26, %v429_v37  ;;  %v3182_v27 = vmin.f32 %v1323_v57, 1.0 }
 0x17f   : > { %v1433_v25 = vmul.f32 9.0, %v1417_v45  ;;  %v3184_v30 = vmin.f32 %v1322_v59, 1.0  ;;  %v1583_v54 = vsel %vm1582_vm6, %v1581_v46, %v1576_v55  ;;  %v1601_v58 = vsel %vm1582_vm6, %v1600_v63, %v1596_v5 }
 0x180   : > { %v1285_v61 = vpop.xlane.xlu1 %1284  ;;  %v1416_v1 = vmul.f32 %v2524_v35, %v1400_v51  ;;  %v1648_v60 = vsel %vm1647_vm7, %v1592_v16, %v1583_v54  ;;  %v1610_v7 = vsel %vm1582_vm6, %v1609_v9, %v1605_v21  ;;  %v1618_v23 = vrot.slane %v3182_v27, %v3130_v8 }
 0x181   : > { %v1282_v62 = vpop.xlane.xlu0 %1281  ;;  %v3167_v3 = vadd.f32 %v1285_v61, %v960_v40  ;;  %v1449_v48 = vmul.f32 %v1433_v25, %v1337_v33  ;;  %v1650_v63 = vsel %vm1649_vm8, %v1601_v58, %v1648_v60 }
 0x182   : > { %v3169_v10 = vadd.f32 %v1282_v62, %v959_v53  ;;  %v1432_v22 = vmul.f32 9.0, %v1416_v1 }
 0x183   : > { %v3179_v18 = vadd.f32 1e-08, %v3167_v3  ;;  %v1465_v26 = vmul.f32 %v3030_v56, %v1449_v48 }
 0x184   : > { %v3187_v13 = vadd.f32 1e-08, %v3169_v10  ;;  %v942_v31 = vpop.xlane.xlu1 %941  ;;  %v2526_v32 = vpop.eup %2525  ;;  %v1448_v34 = vmul.f32 %v1432_v22, %v1336_v44  ;;  %v1325_v44 = vmax.f32 %v3167_v3, 0.0  ;;  %v1324_v1 = vmax.f32 %v3169_v10, 0.0 }
 0x185   : > { %v939_v15 = vpop.xlane.xlu0 %938  ;;  %2529 = vrcp.f32 %v3179_v18  ;;  %v2129_v56 = vpack.c.bf16 %v1465_v26, %v1465_v26  ;;  %v1387_v50 = vmul.f32 %v2526_v32, %v3128_v42  ;;  %v2528_v43 = vpop.eup %2527  ;;  %v1614_v42 = vrot.slane %v3184_v30, %v3132_v12 }
 0x186   : > { %v1464_v28 = vmul.f32 %v3026_v52, %v1448_v34  ;;  %2531 = vrcp.f32 %v3187_v13  ;;  %v1386_v36 = vmul.f32 %v2528_v43, %v3138_v47  ;;  %v1711_v41 = vmul.f32 %v1465_v26, %v1465_v26 }
 0x187   : > { %1546 = vst.msk [vmem:[%s3073_s16 + $0x1c] sm:$0xf] %vm1538_vm4, %v2129_v56  ;;  %v1403_v35 = vsub.f32 2.0, %v1387_v50  ;;  %v1678_v53 = vsel %vm1664_vm5, %v1465_v26, 0.0  ;;  %v961_v40 = vadd.f32 %v939_v15, %v3150_v29  ;;  %v1340_v60 = vmin.f32 %v1324_v1, 1.0 }
 0x188   : > { %v3204_v37 = vpop.xlane.xlu1 %437  ;;  %v2128_v39 = vpack.c.bf16 %v1464_v28, %v1464_v28  ;;  %v1676_v52 = vsel %vm1664_vm5, %v1464_v28, 0.0  ;;  %v1710_v49 = vmul.f32 %v1464_v28, %v1464_v28  ;;  %v1402_v45 = vsub.f32 2.0, %v1386_v36 }
 0x189   : > { %v435_v38 = vpop.xlane.xlu0 %434  ;;  %v1677_v33 = vadd.f32 %v1676_v52, %v3148_v20  ;;  %v1419_v51 = vmul.f32 %v2526_v32, %v1403_v35  ;;  %v1733_v55 = vsel %vm1664_vm5, %v1711_v41, 0.0 }
 0x18a   : > { %1545 = vst.msk [vmem:[%s3073_s16 + $0x18] sm:$0xf] %vm1538_vm4, %v2128_v39  ;;  %v1731_v47 = vsel %vm1664_vm5, %v1710_v49, 0.0  ;;  %v962_v46 = vadd.f32 %v942_v31, %v435_v38  ;;  %v1418_v57 = vmul.f32 %v2528_v43, %v1402_v45  ;;  %v1652_v31 = vsel %vm1651_vm9, %v1610_v7, %v1650_v63 }
 0x18b   : > { %v1732_v25 = vadd.f32 %v1731_v47, %v3158_v24  ;;  %v1679_v59 = vadd.f32 %v1678_v53, %v1677_v33  ;;  %v1435_v61 = vmul.f32 9.0, %v1419_v51  ;;  %v3219_v24 = vmin.f32 %v1325_v44, 1.0 }
 0x18c   : > { %v1291_v62 = vpop.xlane.xlu1 %1290  ;;  %v1434_v5 = vmul.f32 9.0, %v1418_v57 }
 0x18d   : > { %v1288_v20 = vpop.xlane.xlu0 %1287  ;;  %v1311_v3 = vadd.f32 %v1291_v62, %v962_v46  ;;  %v1734_v48 = vadd.f32 %v1733_v55, %v1732_v25  ;;  %v1451_v29 = vmul.f32 %v1435_v61, %v3182_v27  ;;  %v1619_v27 = vsel %vm1582_vm6, %v1618_v23, %v1614_v42 }
 0x18e   : > { %v1310_v16 = vadd.f32 %v1288_v20, %v961_v40  ;;  %v1450_v15 = vmul.f32 %v1434_v5, %v3184_v30  ;;  %v1654_v1 = vsel %vm1653_vm10, %v1619_v27, %v1652_v31 }
 0x18f   : > { %v2530_v9 = vpop.eup %2529  ;;  %v1327_v21 = vmax.f32 %v1311_v3, 0.0  ;;  %v3221_v22 = vadd.f32 1e-08, %v1311_v3  ;;  %v1467_v32 = vmul.f32 %v3040_v6, %v1451_v29  ;;  %v1627_v6 = vrot.slane %v3219_v24, %v3130_v8 }
 0x190   : > { %v3223_v26 = vadd.f32 1e-08, %v1310_v16  ;;  %v1389_v10 = vmul.f32 %v2530_v9, %v3179_v18  ;;  %v2532_v34 = vpop.eup %2531  ;;  %v1326_v56 = vmax.f32 %v1310_v16, 0.0  ;;  %v948_v50 = vpop.xlane.xlu1 %947  ;;  %v1466_v7 = vmul.f32 %v3036_v2, %v1450_v15 }
 0x191   : > { %v945_v54 = vpop.xlane.xlu0 %944  ;;  %2533 = vrcp.f32 %v3221_v22  ;;  %v1388_v58 = vmul.f32 %v2532_v34, %v3187_v13  ;;  %v2131_v18 = vpack.c.bf16 %v1467_v32, %v1467_v32  ;;  %v1713_v30 = vmul.f32 %v1467_v32, %v1467_v32 }
 0x192   : > { %v1405_v43 = vsub.f32 2.0, %v1389_v10  ;;  %v3235_v28 = vmin.f32 %v1327_v21, 1.0  ;;  %2535 = vrcp.f32 %v3223_v26  ;;  %v2130_v23 = vpack.c.bf16 %v1466_v7, %v1466_v7 }
 0x193   : > { %v1404_v35 = vsub.f32 2.0, %v1388_v58  ;;  %v1680_v36 = vsel %vm1664_vm5, %v1466_v7, 0.0  ;;  %v1712_v42 = vmul.f32 %v1466_v7, %v1466_v7  ;;  %1548 = vst.msk [vmem:[%s3073_s16 + $0x24] sm:$0xf] %vm1538_vm4, %v2131_v18  ;;  %v1623_v2 = vrot.slane %v1340_v60, %v3132_v12 }
 0x194   : > { %v1681_v38 = vadd.f32 %v1680_v36, %v1679_v59  ;;  %v1421_v39 = vmul.f32 %v2530_v9, %v1405_v43  ;;  %v3242_v52 = vmin.f32 %v1326_v56, 1.0  ;;  %1547 = vst.msk [vmem:[%s3073_s16 + $0x20] sm:$0xf] %vm1538_vm4, %v2130_v23  ;;  %v1682_v33 = vsel %vm1664_vm5, %v1467_v32, 0.0  ;;  %v1297_v40 = vpop.xlane.xlu1 %1296 }
 0x195   : > { %v441_v13 = vpop.xlane.xlu0 %440  ;;  %v1420_v49 = vmul.f32 %v2532_v34, %v1404_v35  ;;  %v1735_v41 = vsel %vm1664_vm5, %v1712_v42, 0.0  ;;  %v963_v53 = vadd.f32 %v945_v54, %v3204_v37  ;;  %v1737_v25 = vsel %vm1664_vm5, %v1713_v30, 0.0 }
 0x196   : > { %v964_v45 = vadd.f32 %v948_v50, %v441_v13  ;;  %v1736_v44 = vadd.f32 %v1735_v41, %v1734_v48  ;;  %v1437_v51 = vmul.f32 9.0, %v1421_v39  ;;  %v1683_v47 = vadd.f32 %v1682_v33, %v1681_v38 }
 0x197   : > { %v1436_v46 = vmul.f32 9.0, %v1420_v49  ;;  %v1636_v57 = vrot.slane %v3235_v28, %v3130_v8  ;;  %v1632_v37 = vrot.slane %v3242_v52, %v3132_v12  ;;  %v1628_v48 = vsel %vm1582_vm6, %v1627_v6, %v1623_v2 }
 0x198   : > { %v1313_v59 = vadd.f32 %v1297_v40, %v964_v45  ;;  %v1453_v62 = vmul.f32 %v1437_v51, %v3219_v24  ;;  %v1738_v20 = vadd.f32 %v1737_v25, %v1736_v44  ;;  %v1656_v23 = vsel %vm1655_vm11, %v1628_v48, %v1654_v1 }
 0x199   : > { %v1294_v61 = vpop.xlane.xlu0 %1293  ;;  %v1452_v3 = vmul.f32 %v1436_v46, %v1340_v60  ;;  %v1637_v54 = vsel %vm1582_vm6, %v1636_v57, %v1632_v37 }
 0x19a   : > { %v1312_v55 = vadd.f32 %v1294_v61, %v963_v53  ;;  %v1329_v16 = vmax.f32 %v1313_v59, 0.0  ;;  %v3260_v63 = vadd.f32 1e-08, %v1313_v59  ;;  %v1469_v29 = vmul.f32 %v3038_v4, %v1453_v62 }
 0x19b   : > { %v2534_v5 = vpop.eup %2533  ;;  %v1468_v21 = vmul.f32 %v3034_v0, %v1452_v3  ;;  %v1658_v13 = vsel %vm1657_vm12, %v1637_v54, %v1656_v23 }
 0x19c   : > { %v1328_v9 = vmax.f32 %v1312_v55, 0.0  ;;  %v3264_v24 = vadd.f32 1e-08, %v1312_v55  ;;  %v1391_v10 = vmul.f32 %v2534_v5, %v3221_v22  ;;  %v3269_v15 = vmin.f32 %v1329_v16, 1.0  ;;  %v2536_v31 = vpop.eup %2535 }
 0x19d   : > { %2537 = vrcp.f32 %v3260_v63  ;;  %v2133_v32 = vpack.c.bf16 %v1469_v29, %v1469_v29  ;;  %v1715_v4 = vmul.f32 %v1469_v29, %v1469_v29  ;;  %v2132_v27 = vpack.c.bf16 %v1468_v21, %v1468_v21 }
 0x19e   : > { %v3276_v34 = vmin.f32 %v1328_v9, 1.0  ;;  %v1684_v0 = vsel %vm1664_vm5, %v1468_v21, 0.0  ;;  %v1714_v60 = vmul.f32 %v1468_v21, %v1468_v21  ;;  %v1407_v22 = vsub.f32 2.0, %v1391_v10 }
 0x19f   : > { %1550 = vst.msk [vmem:[%s3073_s16 + $0x2c] sm:$0xf] %vm1538_vm4, %v2133_v32  ;;  %v1686_v56 = vsel %vm1664_vm5, %v1469_v29, 0.0  ;;  %v1685_v50 = vadd.f32 %v1684_v0, %v1683_v47  ;;  %v1390_v43 = vmul.f32 %v2536_v31, %v3223_v26  ;;  %v1645_v58 = vrot.slane %v3269_v15, %v3130_v8  ;;  %1549 = vst.msk [vmem:[%s3073_s16 + $0x28] sm:$0xf] %vm1538_vm4, %v2132_v27 }
 0x1a0   : > { %v1739_v7 = vsel %vm1664_vm5, %v1714_v60, 0.0  ;;  %2539 = vrcp.f32 %v3264_v24  ;;  %v1641_v18 = vrot.slane %v3276_v34, %v3132_v12  ;;  %v1423_v6 = vmul.f32 %v2534_v5, %v1407_v22 }
 0x1a1   : > { %v1740_v30 = vadd.f32 %v1739_v7, %v1738_v20  ;;  %v1406_v35 = vsub.f32 2.0, %v1390_v43  ;;  %v1687_v26 = vadd.f32 %v1686_v56, %v1685_v50  ;;  %v1741_v8 = vsel %vm1664_vm5, %v1715_v4, 0.0 }
 0x1a2   : > { %v1439_v36 = vmul.f32 9.0, %v1423_v6  ;;  %v1646_v42 = vsel %vm1582_vm6, %v1645_v58, %v1641_v18 }
 0x1a3   : > { %v1422_v12 = vmul.f32 %v2536_v31, %v1406_v35  ;;  %v1742_v2 = vadd.f32 %v1741_v8, %v1740_v30  ;;  %v1660_v38 = vsel %vm1659_vm13, %v1646_v42, %v1658_v13 }
 0x1a4   : > { %v1455_v39 = vmul.f32 %v1439_v36, %v3235_v28  ;;  %1663 = vst.msk [vmem:[%s262_s8] sm:$0xff] %vm1662_vm14, %v1660_v38 }
 0x1a5   : > { %v1438_v49 = vmul.f32 9.0, %v1422_v12 }
 0x1a6   : > { %2554 = shalt.err (!%p2551_p9)
}
 0x1a7   : > { %s2555_s8 = scalar_lea.hbm %s3299_s14, 128  ;;  %s2559_s15 = scalar_lea.hbm %s3460_s3, 512 }
 0x1a8   : > { %p2556_p10 = scmp.ne.s32.totalorder %s3299_s14, %s2555_s8  ;;  %p2560_p13 = scmp.lt.u32.totalorder %s3299_s14, %s3460_s3 }
 0x1a9   : > { %p2561_p0 = scmp.lt.u32.totalorder %s2559_s15, %s2555_s8  ;;  %p2563_p2 = scmp.lt.u32.totalorder %s2555_s8, %s3299_s14 }
 0x1aa   : > { %p2557_p11 = pnand %p2556_p10, %p2785_p3 }
 0x1ab   : > { %p2562_p1 = por %p2561_p0, %p2560_p13 }
 0x1ac   : > { %p2558_p12 = pneg %p2557_p11 }
 0x1ad   : > { %p2564_p4 = por %p2563_p2, %p2562_p1 }
 0x1af   : > { %p2565_p5 = pnand %p2564_p4, %p2558_p12 }
 0x1b1   : > { %2568 = shalt.err (!%p2565_p5)
}
 0x1b2   : > { %2255 = dma.vmem_to_hbm [thread:$0]  (%p2785_p3), %s3301_s9, 128, %s3299_s14, %s1768_s13   ;;  %v2538_v28 = vpop.eup %2537  ;;  %v1471_v41 = vmul.f32 %v3048_v19, %v1455_v39  ;;  %v1454_v45 = vmul.f32 %v1438_v49, %v3242_v52  ;;  %vm1702_vm15 = vcmask 57344  }
 0x1b3   : > { %v1393_v33 = vmul.f32 %v2538_v28, %v3260_v63  ;;  %v2540_v53 = vpop.eup %2539  ;;  %s3470_s26 = sadd.s32 4294967295, %s2695_s25   ;;  %s268_s9 = scalar_lea.vmem [#allocation4], %s3253_s17 }
 0x1b4   : > { %v2135_v44 = vpack.c.bf16 %v1471_v41, %v1471_v41  ;;  %v1470_v47 = vmul.f32 %v3044_v14, %v1454_v45  ;;  %v1717_v40 = vmul.f32 %v1471_v41, %v1471_v41  ;;  %v1392_v59 = vmul.f32 %v2540_v53, %v3264_v24  ;;  %s3355_s27 = sand.u32 1, %s3470_s26   ;;  %s1810_s14 = sshll.u32 %s268_s9, 4  ;;  %s3367_s14 = int_to_ptr.vmem [resolvable:$true] %s1810_s14 }
 0x1b5   : > { %v1409_v51 = vsub.f32 2.0, %v1393_v33  ;;  %v1690_v14 = vsel %vm1664_vm5, %v1471_v41, 0.0  ;;  %s3465_s13 = scalar_lea.vmem [#allocation6], %s3253_s17  ;;  %s1773_s26 = scalar_lea.sflag [#allocation5], %s3355_s27 }
 0x1b6   : > { %1552 = vst.msk [vmem:[%s3073_s16 + $0x34] sm:$0xf] %vm1538_vm4, %v2135_v44  ;;  %v2134_v46 = vpack.c.bf16 %v1470_v47, %v1470_v47  ;;  %v1688_v25 = vsel %vm1664_vm5, %v1470_v47, 0.0  ;;  %v1716_v57 = vmul.f32 %v1470_v47, %v1470_v47  ;;  %v1408_v62 = vsub.f32 2.0, %v1392_v59  ;;  %s1825_s30 = sshll.u32 %s3465_s13, 4  ;;  %s2569_s10 = scalar_lea.vmem %s3367_s14, 16  ;;  %s3375_s30 = int_to_ptr.vmem [resolvable:$true] %s1825_s30 }
 0x1b7   : > { %v1689_v61 = vadd.f32 %v1688_v25, %v1687_v26  ;;  %v1425_v19 = vmul.f32 %v2538_v28, %v1409_v51  ;;  %v1745_v3 = vsel %vm1664_vm5, %v1717_v40, 0.0  ;;  %p2570_p6 = scmp.ne.s32.totalorder %s3367_s14, %s2569_s10  ;;  %s2700_s8 = smov [#allocation4]  }
 0x1b8   : > { %1551 = vst.msk [vmem:[%s3073_s16 + $0x30] sm:$0xf] %vm1538_vm4, %v2134_v46  ;;  %v1743_v52 = vsel %vm1664_vm5, %v1716_v57, 0.0  ;;  %v1424_v1 = vmul.f32 %v2540_v53, %v1408_v62  ;;  %s2573_s13 = sshll.u32 %s2700_s8, 4  ;;  %s2574_s13 = int_to_ptr.vmem [resolvable:$false] %s2573_s13 }
 0x1b9   : > { %v1744_v20 = vadd.f32 %v1743_v52, %v1742_v2  ;;  %v1441_v37 = vmul.f32 9.0, %v1425_v19  ;;  %v1691_v55 = vadd.f32 %v1690_v14, %v1689_v61  ;;  %p2571_p7 = pnand %p2570_p6, %p2785_p3  ;;  %s2575_s0 = scalar_lea.vmem %s2574_s13, 32 }
 0x1ba   : > { %v1440_v5 = vmul.f32 9.0, %v1424_v1  ;;  %p2576_p10 = scmp.lt.s32.totalorder %s3367_s14, %s2574_s13  ;;  %p2577_p11 = scmp.lt.s32.totalorder %s2575_s0, %s2569_s10 }
 0x1bb   : > { %v1457_v16 = vmul.f32 %v1441_v37, %v3269_v15  ;;  %v1746_v63 = vadd.f32 %v1745_v3, %v1744_v20  ;;  %p2572_p9 = pneg %p2571_p7 }
 0x1bc   : > { %v1456_v29 = vmul.f32 %v1440_v5, %v3276_v34  ;;  %p2578_p12 = por %p2577_p11, %p2576_p10 }
 0x1bd   : > { %v1473_v48 = vmul.f32 %v3046_v17, %v1457_v16 }
 0x1be   : > { %v1472_v24 = vmul.f32 %v3042_v11, %v1456_v29  ;;  %p2579_p13 = pnand %p2578_p12, %p2572_p9 }
 0x1bf   : > { %v2137_v9 = vpack.c.bf16 %v1473_v48, %v1473_v48  ;;  %v1719_v31 = vmul.f32 %v1473_v48, %v1473_v48  ;;  %v1694_v17 = vsel %vm1664_vm5, %v1473_v48, 0.0 }
 0x1c0   : > { %v2136_v21 = vpack.c.bf16 %v1472_v24, %v1472_v24  ;;  %v1718_v10 = vmul.f32 %v1472_v24, %v1472_v24  ;;  %v1692_v32 = vsel %vm1664_vm5, %v1472_v24, 0.0 }
 0x1c1   : > { %1554 = vst.msk [vmem:[%s3073_s16 + $0x3c] sm:$0xf] %vm1538_vm4, %v2137_v9  ;;  %v1693_v4 = vadd.f32 %v1692_v32, %v1691_v55  ;;  %v1749_v11 = vsel %vm1664_vm5, %v1719_v31, 0.0 }
 0x1c2   : > { %1553 = vst.msk [vmem:[%s3073_s16 + $0x38] sm:$0xf] %vm1538_vm4, %v2136_v21  ;;  %v1747_v15 = vsel %vm1664_vm5, %v1718_v10, 0.0  ;;  %s2117_s16 = sshll.u32 %s3273_s22, 4 }
 0x1c3   : > { %v1695_v54 = vadd.f32 %v1694_v17, %v1693_v4  ;;  %v1748_v34 = vadd.f32 %v1747_v15, %v1746_v63  ;;  %s3365_s12 = scalar_lea.hbm %s3461_s4, %s2117_s16  ;;  %s3373_s21 = scalar_lea.hbm %s3462_s5, %s2117_s16 }
 0x1c5   : > { %v1750_v27 = vadd.f32 %v1749_v11, %v1748_v34  ;;  %v1696_v0 = vrot.slane %v1695_v54, 4 }
 0x1c7   : > { %v1751_v60 = vrot.slane %v1750_v27, 4  ;;  %v1697_v22 = vadd.f32 %v1696_v0, %v1695_v54 }
 0x1c9   : > { %v1698_v56 = vrot.slane %v1697_v22, 2  ;;  %v1752_v50 = vadd.f32 %v1751_v60, %v1750_v27 }
 0x1cb   : > { %v1699_v43 = vadd.f32 %v1698_v56, %v1697_v22  ;;  %v1753_v58 = vrot.slane %v1752_v50, 2 }
 0x1cd   : > { %v1700_v7 = vrot.slane %v1699_v43, 1  ;;  %v1754_v18 = vadd.f32 %v1753_v58, %v1752_v50 }
 0x1cf   : > { %v1701_v6 = vadd.f32 %v1700_v7, %v1699_v43  ;;  %v1755_v30 = vrot.slane %v1754_v18, 1 }
 0x1d1   : > { %1703 = vst.msk [vmem:[%s268_s9] sm:$0x1] %vm1702_vm15, %v1701_v6  ;;  %v1756_v35 = vadd.f32 %v1755_v30, %v1754_v18 }
 0x1d2   : > { %2582 = shalt.err (!%p2579_p13)
}
 0x1d3   : > { %s2583_s16 = scalar_lea.hbm %s3365_s12, 16  ;;  %s2587_s15 = scalar_lea.hbm %s3461_s4, 64 }
 0x1d4   : > { %p2584_p0 = scmp.ne.s32.totalorder %s3365_s12, %s2583_s16  ;;  %p2588_p4 = scmp.lt.u32.totalorder %s3365_s12, %s3461_s4 }
 0x1d5   : > { %p2589_p5 = scmp.lt.u32.totalorder %s2587_s15, %s2583_s16  ;;  %p2591_p7 = scmp.lt.u32.totalorder %s2583_s16, %s3365_s12 }
 0x1d6   : > { %p2585_p1 = pnand %p2584_p0, %p2785_p3 }
 0x1d7   : > { %p2590_p6 = por %p2589_p5, %p2588_p4 }
 0x1d8   : > { %p2586_p2 = pneg %p2585_p1 }
 0x1d9   : > { %p2592_p9 = por %p2591_p7, %p2590_p6 }
 0x1db   : > { %p2593_p10 = pnand %p2592_p9, %p2586_p2 }
 0x1dd   : > { %2596 = shalt.err (!%p2593_p10)
}
 0x1de   : > { %2256 = dma.vmem_to_hbm [thread:$0]  (%p2785_p3), %s3367_s14, 16, %s3365_s12, %s1773_s26  }
 0x1df   : > { %s3471_s0 = scalar_lea.vmem [#allocation6], %s3253_s17  ;;  %s2597_s10 = scalar_lea.vmem %s3375_s30, 16 }
 0x1e0   : > { %1757 = vst.msk [vmem:[%s3471_s0] sm:$0x1] %vm1702_vm15, %v1756_v35  ;;  %p2598_p11 = scmp.ne.s32.totalorder %s3375_s30, %s2597_s10  ;;  %s2701_s16 = smov [#allocation6]  }
 0x1e1   : > { %s2601_s9 = sshll.u32 %s2701_s16, 4  ;;  %s2602_s9 = int_to_ptr.vmem [resolvable:$false] %s2601_s9 }
 0x1e2   : > { %p2599_p12 = pnand %p2598_p11, %p2785_p3  ;;  %s2603_s22 = scalar_lea.vmem %s2602_s9, 32 }
 0x1e3   : > { %p2604_p0 = scmp.lt.s32.totalorder %s3375_s30, %s2602_s9  ;;  %p2605_p1 = scmp.lt.s32.totalorder %s2603_s22, %s2597_s10 }
 0x1e4   : > { %p2600_p13 = pneg %p2599_p12 }
 0x1e5   : > { %p2606_p2 = por %p2605_p1, %p2604_p0 }
 0x1e7   : > { %p2607_p4 = pnand %p2606_p2, %p2600_p13 }
 0x1e9   : > { %2610 = shalt.err (!%p2607_p4)
}
 0x1ea   : > { %s2611_s17 = scalar_lea.hbm %s3373_s21, 16  ;;  %s2615_s15 = scalar_lea.hbm %s3462_s5, 64 }
 0x1eb   : > { %p2612_p5 = scmp.ne.s32.totalorder %s3373_s21, %s2611_s17  ;;  %p2616_p9 = scmp.lt.u32.totalorder %s3373_s21, %s3462_s5 }
 0x1ec   : > { %p2617_p10 = scmp.lt.u32.totalorder %s2615_s15, %s2611_s17  ;;  %p2619_p12 = scmp.lt.u32.totalorder %s2611_s17, %s3373_s21 }
 0x1ed   : > { %p2613_p6 = pnand %p2612_p5, %p2785_p3 }
 0x1ee   : > { %p2618_p11 = por %p2617_p10, %p2616_p9 }
 0x1ef   : > { %p2614_p7 = pneg %p2613_p6 }
 0x1f0   : > { %p2620_p13 = por %p2619_p12, %p2618_p11 }
 0x1f2   : > { %p2621_p0 = pnand %p2620_p13, %p2614_p7 }
 0x1f4   : > { %2624 = shalt.err (!%p2621_p0)
}
 0x1f5   : > { %2257 = dma.vmem_to_hbm [thread:$0]  (%p2785_p3), %s3375_s30, 16, %s3373_s21, %s1773_s26  }
 0x1f6 PF: > { %p2271_p1 = scmp.ge.s32.totalorder %s2695_s25, 2  ;;  %s1849_s0 = sand.u32 1, %s2667_s18  }
 0x1f7   : > { %s1850_s10 = scalar_lea.sflag [#allocation3], %s1849_s0 }
 0x1f8   : > { %p2262_p2 = pnand %p2271_p1, %p2796_p8 }
 0x1fa   : > { %2658 = dma.done.wait (!%p2262_p2), %s1850_s10, 128  }
 0x1fb   : > { %2660 = vsyncadd (!%p2262_p2), %s1850_s10, 4294967168  ;;  %s3472_s16 = sadd.s32 4294967294, %s2695_s25  }
 0x1fc   : > { %s1858_s9 = sand.u32 1, %s3472_s16  }
 0x1fd   : > { %s1859_s6 = scalar_lea.sflag [#allocation5], %s1858_s9 }
 0x1fe   : > { %2662 = dma.done.wait (!%p2262_p2), %s1859_s6, 32  }
 0x1ff   : > { %2664 = vsyncadd (!%p2262_p2), %s1859_s6, 4294967264  ;;  %s22_s25 = sadd.s32 1, %s2695_s25   ;;  %s3473_s18 = smov %s2671_s19 }
 0x200   : > { %p19_p3 = scmp.ge.s32.totalorder %s22_s25, 6   ;;  %s3474_s19 = smov %s2675_s20 }
 0x201   : > { %s3475_s20 = smov %s2805_s11  ;;  %s3476_s21 = smov %s2687_s23 }
 0x202   : > { %s3477_s22 = smov %s2691_s24  ;;  %s3478_s23 = smov %s3481_s28 }
 0x203   : > { %s3479_s24 = smov %s3485_s29  ;;  %21 = sbr.rel (!%p19_p3) target bundleno = 9 (0x9), region = 111 }
 0x20a   :  { %1871 = vsyncpa [#allocation3], 1 }
 0x20b   :  { %1873 = vsyncpa [#allocation3 + $0x1], 1 }
 0x20c   :  { %1874 = vsyncpa [#allocation5], 1 }
 0x20d   :  { %1876 = vsyncpa [#allocation5 + $0x1], 1 }

</bundles_post_ra>
